<compile_context>
chip_gen: v5e
topology: v5e:2x2
jax: 0.10.0
libtpu: 0.0.40
codegen_flags: <defaults>
</compile_context>

<pallas_src>
from functools import partial

import jax
import jax.numpy as jnp
from jax.experimental import pallas as pl
from jax.experimental.pallas import tpu as pltpu

_LAYER_DIMS = [(28 * 28, 512), (512, 512), (512, 128), (128, 128), (128, 10)]
_IN_FEAT = 28 * 28          # 784
_IN_PAD = 896               # 7 * 128  (lane-aligned K for layer 1)
_OUT_PAD = 128              # final logits padded 10 -> 128 lanes
_TM_MAX = 512               # max batch rows per grid step


# -----------------------------------------------------------------------------
# Fused 5-layer MLP kernel.  One (TM, 896) activation tile flows through all
# layers entirely inside VMEM; only x and the final logits touch HBM per tile.
# -----------------------------------------------------------------------------
def _mlp_kernel(x_ref,
                w1_ref, b1_ref, w2_ref, b2_ref, w3_ref, b3_ref,
                w4_ref, b4_ref, w5_ref, b5_ref,
                o_ref):
    cdt = w1_ref.dtype  # bf16 compute dtype feeding the MXU

    # Layer 1: (TM, 896) @ (896, 512) + b, ReLU.   (Dropout = identity, eval)
    h = jnp.dot(x_ref[...], w1_ref[...], preferred_element_type=jnp.float32)
    h = jnp.maximum(h + b1_ref[...], 0.0).astype(cdt)

    # Layer 2: (TM, 512) @ (512, 512) + b, ReLU.
    h = jnp.dot(h, w2_ref[...], preferred_element_type=jnp.float32)
    h = jnp.maximum(h + b2_ref[...], 0.0).astype(cdt)

    # Layer 3: (TM, 512) @ (512, 128) + b, ReLU.
    h = jnp.dot(h, w3_ref[...], preferred_element_type=jnp.float32)
    h = jnp.maximum(h + b3_ref[...], 0.0).astype(cdt)

    # Layer 4: (TM, 128) @ (128, 128) + b, ReLU.
    h = jnp.dot(h, w4_ref[...], preferred_element_type=jnp.float32)
    h = jnp.maximum(h + b4_ref[...], 0.0).astype(cdt)

    # Layer 5 (logits, zero-padded to 128 lanes): no ReLU; bf16 writeback.
    h = jnp.dot(h, w5_ref[...], preferred_element_type=jnp.float32)
    o_ref[...] = (h + b5_ref[...]).astype(o_ref.dtype)


# -----------------------------------------------------------------------------
# Parameters (PyTorch-style uniform init shapes). nn.Linear(in, out) stores
# weight (out, in); we keep it pre-transposed to (in, out) so kernels do x @ w.
# -----------------------------------------------------------------------------
def init_params(key):
    params = []
    for fan_in, fan_out in _LAYER_DIMS:
        key, kw, kb = jax.random.split(key, 3)
        bound = 1.0 / (fan_in ** 0.5)
        w = jax.random.uniform(kw, (fan_in, fan_out), jnp.float32, -bound, bound)
        b = jax.random.uniform(kb, (1, fan_out), jnp.float32, -bound, bound)
        params.append((w, b))
    return params


def _prep_params(params, compute_dtype):
    """Pad layer-1 K dim (784->896) and layer-5 N dim (10->128) with zeros,
    cast weights to the bf16 compute dtype, keep biases in f32 (v5e epilogue)."""
    (w1, b1), (w2, b2), (w3, b3), (w4, b4), (w5, b5) = params

    w1p = jnp.pad(w1, ((0, _IN_PAD - w1.shape[0]), (0, 0)))
    w5p = jnp.pad(w5, ((0, 0), (0, _OUT_PAD - w5.shape[1])))
    b5p = jnp.pad(b5, ((0, 0), (0, _OUT_PAD - b5.shape[1])))

    ws = [w.astype(compute_dtype) for w in (w1p, w2, w3, w4, w5p)]
    bs = [b.astype(jnp.float32) for b in (b1, b2, b3, b4, b5p)]
    return ws, bs


def _pick_tm(n):
    """Batch rows per grid step: multiple of 16 (bf16 sublane packing),
    capped at _TM_MAX to amortize per-step overhead, and small enough that
    the batch splits into >= 2 tiles when possible (v7x: 2 TensorCores)."""
    n16 = ((n + 15) // 16) * 16
    tm = min(_TM_MAX, n16)
    if n16 >= 32:                                   # enough rows to split
        half = ((-(-n16 // 2)) + 15) // 16 * 16     # ceil(n16/2) rounded to 16
        tm = min(tm, half)
    return max(tm, 16)


# -----------------------------------------------------------------------------
# Forward pass matching NeuralNetwork.forward (eval mode).
# -----------------------------------------------------------------------------
@partial(jax.jit, static_argnames=("compute_dtype",))
def neural_network_forward(x_nchw, params, *, compute_dtype=jnp.bfloat16):
    n = x_nchw.shape[0]
    tm = _pick_tm(n)
    n_tiles = pl.cdiv(n, tm)
    n_pad = n_tiles * tm

    # nn.Flatten -> (N, 784).  Single fused cast+pad (one HBM pass): batch
    # rows padded to the tile grid, features lane-padded 784 -> 896.
    x = x_nchw.reshape(n, -1).astype(compute_dtype)
    xp = jnp.pad(x, ((0, n_pad - n), (0, _IN_PAD - _IN_FEAT)))

    ws, bs = _prep_params(params, compute_dtype)

    # BlockSpecs: x / logits tiled over the batch axis; weights & biases are
    # single full blocks with constant index maps -> DMA'd once, resident in
    # VMEM across all batch tiles.
    in_specs = [pl.BlockSpec((tm, _IN_PAD), lambda i: (i, 0))]
    args = [xp]
    for w, b in zip(ws, bs):
        in_specs.append(pl.BlockSpec(w.shape, lambda i: (0, 0)))
        in_specs.append(pl.BlockSpec(b.shape, lambda i: (0, 0)))
        args.extend((w, b))
    out_spec = pl.BlockSpec((tm, _OUT_PAD), lambda i: (i, 0))

    out_padded = pl.pallas_call(
        _mlp_kernel,
        out_shape=jax.ShapeDtypeStruct((n_pad, _OUT_PAD), compute_dtype),
        grid_spec=pltpu.PrefetchScalarGridSpec(
            num_scalar_prefetch=0,
            grid=(n_tiles,),
            in_specs=in_specs,
            out_specs=out_spec,
        ),
        compiler_params=pltpu.CompilerParams(
            # Independent batch tiles -> shardable across v7x's 2 TensorCores.
            dimension_semantics=("parallel",),
        ),
    )(*args)

    # Slice padded rows / lanes back to the real logits; return f32.
    return out_padded[:n, :10].astype(jnp.float32)


# Pure-JAX f32 reference for a correctness sanity check.
def _reference_forward(x_nchw, params):
    n = x_nchw.shape[0]
    h = x_nchw.reshape(n, -1)
    for i, (w, b) in enumerate(params):
        h = h @ w + b
        if i < len(params) - 1:
            h = jnp.maximum(h, 0.0)
    return h


if __name__ == "__main__":
    key = jax.random.PRNGKey(0)
    key_params, key_x = jax.random.split(key)

    params = init_params(key_params)

    # Small MNIST-like batch, NCHW layout as PyTorch would provide.
    batch = 2
    x = jax.random.normal(key_x, (batch, 1, 28, 28), dtype=jnp.float32)

    logits = neural_network_forward(x, params)
    logits = jax.block_until_ready(logits)

    assert logits.shape == (batch, 10), logits.shape
    assert logits.dtype == jnp.float32

    # Tolerance check vs. f32 reference (bf16 weights/activations drift).
    ref = jax.block_until_ready(_reference_forward(x, params))
    max_err = float(jnp.max(jnp.abs(logits - ref)))
    assert max_err < 0.25, f"max abs error vs f32 reference: {max_err}"

    print("KERNEL_OK")
</pallas_src>

<mosaic_0001>
module attributes {stable_mosaic.version = 11 : i64} {
  func.func @_mlp_kernel(%arg0: i32, %arg1: memref<16x896xbf16, #tpu.memory_space<vmem>>, %arg2: memref<896x512xbf16, #tpu.memory_space<vmem>>, %arg3: memref<1x512xf32, #tpu.memory_space<vmem>>, %arg4: memref<512x512xbf16, #tpu.memory_space<vmem>>, %arg5: memref<1x512xf32, #tpu.memory_space<vmem>>, %arg6: memref<512x128xbf16, #tpu.memory_space<vmem>>, %arg7: memref<1x128xf32, #tpu.memory_space<vmem>>, %arg8: memref<128x128xbf16, #tpu.memory_space<vmem>>, %arg9: memref<1x128xf32, #tpu.memory_space<vmem>>, %arg10: memref<128x128xbf16, #tpu.memory_space<vmem>>, %arg11: memref<1x128xf32, #tpu.memory_space<vmem>>, %arg12: memref<16x128xbf16, #tpu.memory_space<vmem>>) attributes {dimension_semantics = [#tpu.dimension_semantics<parallel>], iteration_bounds = array<i64: 1>, scalar_prefetch = 0 : i64, scratch_operands = 0 : i64, tpu.core_type = #tpu.core_type<tc>, window_params = [{transform_indices = @transform_0, window_bounds = array<i64: 16, 896>}, {pipeline_mode = #tpu.pipeline_mode<synchronous>, transform_indices = @transform_1, window_bounds = array<i64: 896, 512>}, {pipeline_mode = #tpu.pipeline_mode<synchronous>, transform_indices = @transform_2, window_bounds = array<i64: 1, 512>}, {pipeline_mode = #tpu.pipeline_mode<synchronous>, transform_indices = @transform_3, window_bounds = array<i64: 512, 512>}, {pipeline_mode = #tpu.pipeline_mode<synchronous>, transform_indices = @transform_4, window_bounds = array<i64: 1, 512>}, {pipeline_mode = #tpu.pipeline_mode<synchronous>, transform_indices = @transform_5, window_bounds = array<i64: 512, 128>}, {pipeline_mode = #tpu.pipeline_mode<synchronous>, transform_indices = @transform_6, window_bounds = array<i64: 1, 128>}, {pipeline_mode = #tpu.pipeline_mode<synchronous>, transform_indices = @transform_7, window_bounds = array<i64: 128, 128>}, {pipeline_mode = #tpu.pipeline_mode<synchronous>, transform_indices = @transform_8, window_bounds = array<i64: 1, 128>}, {pipeline_mode = #tpu.pipeline_mode<synchronous>, transform_indices = @transform_9, window_bounds = array<i64: 128, 128>}, {pipeline_mode = #tpu.pipeline_mode<synchronous>, transform_indices = @transform_10, window_bounds = array<i64: 1, 128>}, {transform_indices = @transform_11, window_bounds = array<i64: 16, 128>}]} {
    %c0 = arith.constant 0 : index
    %c0_0 = arith.constant 0 : index
    %0 = vector.load %arg1[%c0, %c0_0] : memref<16x896xbf16, #tpu.memory_space<vmem>>, vector<16x896xbf16>
    %c0_1 = arith.constant 0 : index
    %c0_2 = arith.constant 0 : index
    %1 = vector.load %arg2[%c0_1, %c0_2] : memref<896x512xbf16, #tpu.memory_space<vmem>>, vector<896x512xbf16>
    %cst = arith.constant dense<0.000000e+00> : vector<16x512xf32>
    %2 = tpu.matmul %0, %1, %cst {dimension_numbers = #tpu.dot_dimension_numbers<[1], [0], [0], [1], [0, 0, 1, 1], [], []>} : vector<16x896xbf16>, vector<896x512xbf16>, vector<16x512xf32> -> vector<16x512xf32>
    %c0_3 = arith.constant 0 : index
    %c0_4 = arith.constant 0 : index
    %3 = vector.load %arg3[%c0_3, %c0_4] : memref<1x512xf32, #tpu.memory_space<vmem>>, vector<1x512xf32>
    %4 = vector.broadcast %3 : vector<1x512xf32> to vector<16x512xf32>
    %5 = arith.addf %2, %4 : vector<16x512xf32>
    %cst_5 = arith.constant 0.000000e+00 : f32
    %6 = vector.broadcast %cst_5 : f32 to vector<16x512xf32>
    %7 = arith.maximumf %5, %6 : vector<16x512xf32>
    %8 = arith.truncf %7 : vector<16x512xf32> to vector<16x512xbf16>
    %c0_6 = arith.constant 0 : index
    %c0_7 = arith.constant 0 : index
    %9 = vector.load %arg4[%c0_6, %c0_7] : memref<512x512xbf16, #tpu.memory_space<vmem>>, vector<512x512xbf16>
    %cst_8 = arith.constant dense<0.000000e+00> : vector<16x512xf32>
    %10 = tpu.matmul %8, %9, %cst_8 {dimension_numbers = #tpu.dot_dimension_numbers<[1], [0], [0], [1], [0, 0, 1, 1], [], []>} : vector<16x512xbf16>, vector<512x512xbf16>, vector<16x512xf32> -> vector<16x512xf32>
    %c0_9 = arith.constant 0 : index
    %c0_10 = arith.constant 0 : index
    %11 = vector.load %arg5[%c0_9, %c0_10] : memref<1x512xf32, #tpu.memory_space<vmem>>, vector<1x512xf32>
    %12 = vector.broadcast %11 : vector<1x512xf32> to vector<16x512xf32>
    %13 = arith.addf %10, %12 : vector<16x512xf32>
    %cst_11 = arith.constant 0.000000e+00 : f32
    %14 = vector.broadcast %cst_11 : f32 to vector<16x512xf32>
    %15 = arith.maximumf %13, %14 : vector<16x512xf32>
    %16 = arith.truncf %15 : vector<16x512xf32> to vector<16x512xbf16>
    %c0_12 = arith.constant 0 : index
    %c0_13 = arith.constant 0 : index
    %17 = vector.load %arg6[%c0_12, %c0_13] : memref<512x128xbf16, #tpu.memory_space<vmem>>, vector<512x128xbf16>
    %cst_14 = arith.constant dense<0.000000e+00> : vector<16x128xf32>
    %18 = tpu.matmul %16, %17, %cst_14 {dimension_numbers = #tpu.dot_dimension_numbers<[1], [0], [0], [1], [0, 0, 1, 1], [], []>} : vector<16x512xbf16>, vector<512x128xbf16>, vector<16x128xf32> -> vector<16x128xf32>
    %c0_15 = arith.constant 0 : index
    %c0_16 = arith.constant 0 : index
    %19 = vector.load %arg7[%c0_15, %c0_16] : memref<1x128xf32, #tpu.memory_space<vmem>>, vector<1x128xf32>
    %20 = vector.broadcast %19 : vector<1x128xf32> to vector<16x128xf32>
    %21 = arith.addf %18, %20 : vector<16x128xf32>
    %cst_17 = arith.constant 0.000000e+00 : f32
    %22 = vector.broadcast %cst_17 : f32 to vector<16x128xf32>
    %23 = arith.maximumf %21, %22 : vector<16x128xf32>
    %24 = arith.truncf %23 : vector<16x128xf32> to vector<16x128xbf16>
    %c0_18 = arith.constant 0 : index
    %c0_19 = arith.constant 0 : index
    %25 = vector.load %arg8[%c0_18, %c0_19] : memref<128x128xbf16, #tpu.memory_space<vmem>>, vector<128x128xbf16>
    %cst_20 = arith.constant dense<0.000000e+00> : vector<16x128xf32>
    %26 = tpu.matmul %24, %25, %cst_20 {dimension_numbers = #tpu.dot_dimension_numbers<[1], [0], [0], [1], [0, 0, 1, 1], [], []>} : vector<16x128xbf16>, vector<128x128xbf16>, vector<16x128xf32> -> vector<16x128xf32>
    %c0_21 = arith.constant 0 : index
    %c0_22 = arith.constant 0 : index
    %27 = vector.load %arg9[%c0_21, %c0_22] : memref<1x128xf32, #tpu.memory_space<vmem>>, vector<1x128xf32>
    %28 = vector.broadcast %27 : vector<1x128xf32> to vector<16x128xf32>
    %29 = arith.addf %26, %28 : vector<16x128xf32>
    %cst_23 = arith.constant 0.000000e+00 : f32
    %30 = vector.broadcast %cst_23 : f32 to vector<16x128xf32>
    %31 = arith.maximumf %29, %30 : vector<16x128xf32>
    %32 = arith.truncf %31 : vector<16x128xf32> to vector<16x128xbf16>
    %c0_24 = arith.constant 0 : index
    %c0_25 = arith.constant 0 : index
    %33 = vector.load %arg10[%c0_24, %c0_25] : memref<128x128xbf16, #tpu.memory_space<vmem>>, vector<128x128xbf16>
    %cst_26 = arith.constant dense<0.000000e+00> : vector<16x128xf32>
    %34 = tpu.matmul %32, %33, %cst_26 {dimension_numbers = #tpu.dot_dimension_numbers<[1], [0], [0], [1], [0, 0, 1, 1], [], []>} : vector<16x128xbf16>, vector<128x128xbf16>, vector<16x128xf32> -> vector<16x128xf32>
    %c0_27 = arith.constant 0 : index
    %c0_28 = arith.constant 0 : index
    %35 = vector.load %arg11[%c0_27, %c0_28] : memref<1x128xf32, #tpu.memory_space<vmem>>, vector<1x128xf32>
    %36 = vector.broadcast %35 : vector<1x128xf32> to vector<16x128xf32>
    %37 = arith.addf %34, %36 : vector<16x128xf32>
    %38 = arith.truncf %37 : vector<16x128xf32> to vector<16x128xbf16>
    %c0_29 = arith.constant 0 : index
    %c0_30 = arith.constant 0 : index
    %39 = vector.load %arg12[%c0_29, %c0_30] : memref<16x128xbf16, #tpu.memory_space<vmem>>, vector<16x128xbf16>
    tpu.vector_store %arg12[%c0_29, %c0_30], %38 {strides = array<i32>} : memref<16x128xbf16, #tpu.memory_space<vmem>>, vector<16x128xbf16>,
    return
  }
  func.func @transform_0(%arg0: i32) -> (i32, i32) {
    %c0_i32 = arith.constant 0 : i32
    %c0_i32_0 = arith.constant 0 : i32
    return %arg0, %c0_i32 : i32, i32
  }
  func.func @transform_1(%arg0: i32) -> (i32, i32) {
    %c0_i32 = arith.constant 0 : i32
    %c0_i32_0 = arith.constant 0 : i32
    %c0_i32_1 = arith.constant 0 : i32
    return %c0_i32, %c0_i32_0 : i32, i32
  }
  func.func @transform_2(%arg0: i32) -> (i32, i32) {
    %c0_i32 = arith.constant 0 : i32
    %c0_i32_0 = arith.constant 0 : i32
    %c0_i32_1 = arith.constant 0 : i32
    return %c0_i32, %c0_i32_0 : i32, i32
  }
  func.func @transform_3(%arg0: i32) -> (i32, i32) {
    %c0_i32 = arith.constant 0 : i32
    %c0_i32_0 = arith.constant 0 : i32
    %c0_i32_1 = arith.constant 0 : i32
    return %c0_i32, %c0_i32_0 : i32, i32
  }
  func.func @transform_4(%arg0: i32) -> (i32, i32) {
    %c0_i32 = arith.constant 0 : i32
    %c0_i32_0 = arith.constant 0 : i32
    %c0_i32_1 = arith.constant 0 : i32
    return %c0_i32, %c0_i32_0 : i32, i32
  }
  func.func @transform_5(%arg0: i32) -> (i32, i32) {
    %c0_i32 = arith.constant 0 : i32
    %c0_i32_0 = arith.constant 0 : i32
    %c0_i32_1 = arith.constant 0 : i32
    return %c0_i32, %c0_i32_0 : i32, i32
  }
  func.func @transform_6(%arg0: i32) -> (i32, i32) {
    %c0_i32 = arith.constant 0 : i32
    %c0_i32_0 = arith.constant 0 : i32
    %c0_i32_1 = arith.constant 0 : i32
    return %c0_i32, %c0_i32_0 : i32, i32
  }
  func.func @transform_7(%arg0: i32) -> (i32, i32) {
    %c0_i32 = arith.constant 0 : i32
    %c0_i32_0 = arith.constant 0 : i32
    %c0_i32_1 = arith.constant 0 : i32
    return %c0_i32, %c0_i32_0 : i32, i32
  }
  func.func @transform_8(%arg0: i32) -> (i32, i32) {
    %c0_i32 = arith.constant 0 : i32
    %c0_i32_0 = arith.constant 0 : i32
    %c0_i32_1 = arith.constant 0 : i32
    return %c0_i32, %c0_i32_0 : i32, i32
  }
  func.func @transform_9(%arg0: i32) -> (i32, i32) {
    %c0_i32 = arith.constant 0 : i32
    %c0_i32_0 = arith.constant 0 : i32
    %c0_i32_1 = arith.constant 0 : i32
    return %c0_i32, %c0_i32_0 : i32, i32
  }
  func.func @transform_10(%arg0: i32) -> (i32, i32) {
    %c0_i32 = arith.constant 0 : i32
    %c0_i32_0 = arith.constant 0 : i32
    %c0_i32_1 = arith.constant 0 : i32
    return %c0_i32, %c0_i32_0 : i32, i32
  }
  func.func @transform_11(%arg0: i32) -> (i32, i32) {
    %c0_i32 = arith.constant 0 : i32
    %c0_i32_0 = arith.constant 0 : i32
    return %arg0, %c0_i32 : i32, i32
  }
}

</mosaic_0001>

<bundles_post_ra>
// kernel: neural_network_forward.1
= control target key start
LH: loop header
LB: loop body
LE: loop exit
PB: predicated region body
PF: predicated region fallthrough
CT: control target
= control target key end

     0   :  { %s7866_s1 = inlined_call_operand.vmem [shape: bf16[896,512], index: 1, kind: input, shape index: {}]   ;;  %s7867_s0 = inlined_call_operand.vmem [shape: bf16[16,896], index: 0, kind: input, shape index: {}]   ;;  %s7868_s2 = inlined_call_operand.vmem [shape: f32[1,512], index: 2, kind: input, shape index: {}]   ;;  %s7869_s3 = inlined_call_operand.vmem [shape: bf16[512,512], index: 3, kind: input, shape index: {}]   ;;  %s7870_s5 = inlined_call_operand.vmem [shape: bf16[512,128], index: 5, kind: input, shape index: {}]   ;;  %s7871_s6 = inlined_call_operand.vmem [shape: f32[1,128], index: 6, kind: input, shape index: {}]   ;;  %s7872_s4 = inlined_call_operand.vmem [shape: f32[1,512], index: 4, kind: input, shape index: {}]   ;;  %s7873_s8 = inlined_call_operand.vmem [shape: f32[1,128], index: 8, kind: input, shape index: {}]   ;;  %s7874_s7 = inlined_call_operand.vmem [shape: bf16[128,128], index: 7, kind: input, shape index: {}]   ;;  %s7875_s9 = inlined_call_operand.vmem [shape: bf16[128,128], index: 9, kind: input, shape index: {}]   ;;  %s7876_s10 = inlined_call_operand.vmem [shape: f32[1,128], index: 10, kind: input, shape index: {}]   ;;  %s7877_s11 = inlined_call_operand.vmem [shape: bf16[16,128], index: 11, kind: output, shape index: {}]  }
   0x1   :  { %v3490_v0 = vld [vmem:[%s7866_s1 + $0xe0] sm:$0xf]  ;;  %v5013_v1 = vld [vmem:[%s7866_s1 + $0xec] sm:$0xf0] }
   0x2   :  { %v3618_v2 = vld [vmem:[%s7866_s1 + $0x1e0] sm:$0xf]  ;;  %v3491_v3 = vor.u32 %v5013_v1, %v3490_v0  ;;  %v5045_v4 = vld [vmem:[%s7866_s1 + $0x1ec] sm:$0xf0] }
   0x3   :  { %v3746_v5 = vld [vmem:[%s7866_s1 + $0x2e0] sm:$0xf]  ;;  %v5077_v6 = vld [vmem:[%s7866_s1 + $0x2ec] sm:$0xf0]  ;;  %v3619_v7 = vor.u32 %v5045_v4, %v3618_v2 }
   0x4   :  { %v3747_v8 = vor.u32 %v5077_v6, %v3746_v5  ;;  %v3874_v9 = vld [vmem:[%s7866_s1 + $0x3e0] sm:$0xf]  ;;  %v5109_v10 = vld [vmem:[%s7866_s1 + $0x3ec] sm:$0xf0]  ;;  %1436 = vmatpush.bf16.msra.mxu0 %v3491_v3 }
   0x5   :  { %v3474_v11 = vld [vmem:[%s7866_s1 + $0xc0] sm:$0xf]  ;;  %v3875_v12 = vor.u32 %v5109_v10, %v3874_v9  ;;  %v5009_v13 = vld [vmem:[%s7866_s1 + $0xcc] sm:$0xf0]  ;;  %1450 = vmatpush.bf16.msra.mxu1 %v3619_v7 }
   0x6   :  { %v3602_v14 = vld [vmem:[%s7866_s1 + $0x1c0] sm:$0xf]  ;;  %v5041_v15 = vld [vmem:[%s7866_s1 + $0x1cc] sm:$0xf0]  ;;  %1464 = vmatpush.bf16.msra.mxu2 %v3747_v8  ;;  %v3475_v16 = vor.u32 %v5009_v13, %v3474_v11 }
   0x7   :  { %v3603_v17 = vor.u32 %v5041_v15, %v3602_v14  ;;  %v3730_v18 = vld [vmem:[%s7866_s1 + $0x2c0] sm:$0xf]  ;;  %v5073_v19 = vld [vmem:[%s7866_s1 + $0x2cc] sm:$0xf0]  ;;  %1478 = vmatpush.bf16.msra.mxu3 %v3875_v12 }
   0x8   :  { %v3858_v20 = vld [vmem:[%s7866_s1 + $0x3c0] sm:$0xf]  ;;  %v3731_v21 = vor.u32 %v5073_v19, %v3730_v18  ;;  %v5105_v22 = vld [vmem:[%s7866_s1 + $0x3cc] sm:$0xf0]  ;;  %1437 = vmatpush.bf16.msra.mxu0 %v3475_v16 }
   0x9   :  { %v3458_v23 = vld [vmem:[%s7866_s1 + $0xa0] sm:$0xf]  ;;  %v5005_v24 = vld [vmem:[%s7866_s1 + $0xac] sm:$0xf0]  ;;  %v3859_v25 = vor.u32 %v5105_v22, %v3858_v20  ;;  %1451 = vmatpush.bf16.msra.mxu1 %v3603_v17 }
   0xa   :  { %v3586_v26 = vld [vmem:[%s7866_s1 + $0x1a0] sm:$0xf]  ;;  %v5037_v27 = vld [vmem:[%s7866_s1 + $0x1ac] sm:$0xf0]  ;;  %v3459_v29 = vor.u32 %v5005_v24, %v3458_v23  ;;  %1465 = vmatpush.bf16.msra.mxu2 %v3731_v21 }
   0xb   :  { %v3714_v28 = vld [vmem:[%s7866_s1 + $0x2a0] sm:$0xf]  ;;  %v5069_v30 = vld [vmem:[%s7866_s1 + $0x2ac] sm:$0xf0]  ;;  %v3587_v33 = vor.u32 %v5037_v27, %v3586_v26  ;;  %1479 = vmatpush.bf16.msra.mxu3 %v3859_v25 }
   0xc   :  { %v3842_v31 = vld [vmem:[%s7866_s1 + $0x3a0] sm:$0xf]  ;;  %v5101_v32 = vld [vmem:[%s7866_s1 + $0x3ac] sm:$0xf0]  ;;  %v3715_v34 = vor.u32 %v5069_v30, %v3714_v28  ;;  %1438 = vmatpush.bf16.msra.mxu0 %v3459_v29 }
   0xd   :  { %v3442_v35 = vld [vmem:[%s7866_s1 + $0x80] sm:$0xf]  ;;  %v5001_v36 = vld [vmem:[%s7866_s1 + $0x8c] sm:$0xf0]  ;;  %v3843_v38 = vor.u32 %v5101_v32, %v3842_v31  ;;  %1452 = vmatpush.bf16.msra.mxu1 %v3587_v33 }
   0xe   :  { %v3570_v37 = vld [vmem:[%s7866_s1 + $0x180] sm:$0xf]  ;;  %v5033_v39 = vld [vmem:[%s7866_s1 + $0x18c] sm:$0xf0]  ;;  %v3443_v44 = vor.u32 %v5001_v36, %v3442_v35  ;;  %1466 = vmatpush.bf16.msra.mxu2 %v3715_v34 }
   0xf   :  { %v3698_v40 = vld [vmem:[%s7866_s1 + $0x280] sm:$0xf]  ;;  %v5065_v41 = vld [vmem:[%s7866_s1 + $0x28c] sm:$0xf0]  ;;  %v3571_v45 = vor.u32 %v5033_v39, %v3570_v37  ;;  %1480 = vmatpush.bf16.msra.mxu3 %v3843_v38  ;;  %v5011_v37 = vld [vmem:[%s7866_s1 + $0xe4] sm:$0xf] }
  0x10   :  { %v3826_v42 = vld [vmem:[%s7866_s1 + $0x380] sm:$0xf]  ;;  %v5097_v43 = vld [vmem:[%s7866_s1 + $0x38c] sm:$0xf0]  ;;  %v3699_v46 = vor.u32 %v5065_v41, %v3698_v40  ;;  %1439 = vmatpush.bf16.msra.mxu0 %v3443_v44  ;;  %v3492_v38 = vld [vmem:[%s7866_s1 + $0xf0] sm:$0xf0] }
  0x11   :  { %v3426_v47 = vld [vmem:[%s7866_s1 + $0x60] sm:$0xf]  ;;  %v4997_v48 = vld [vmem:[%s7866_s1 + $0x6c] sm:$0xf0]  ;;  %v3827_v50 = vor.u32 %v5097_v43, %v3826_v42  ;;  %1453 = vmatpush.bf16.msra.mxu1 %v3571_v45 }
  0x12   :  { %v3554_v49 = vld [vmem:[%s7866_s1 + $0x160] sm:$0xf]  ;;  %v5029_v51 = vld [vmem:[%s7866_s1 + $0x16c] sm:$0xf0]  ;;  %v3427_v56 = vor.u32 %v4997_v48, %v3426_v47  ;;  %1467 = vmatpush.bf16.msra.mxu2 %v3699_v46  ;;  %v3495_v48 = vor.u32 %v5011_v37, %v3492_v38 }
  0x13   :  { %v3682_v52 = vld [vmem:[%s7866_s1 + $0x260] sm:$0xf]  ;;  %v5061_v53 = vld [vmem:[%s7866_s1 + $0x26c] sm:$0xf0]  ;;  %v3555_v57 = vor.u32 %v5029_v51, %v3554_v49  ;;  %1481 = vmatpush.bf16.msra.mxu3 %v3827_v50  ;;  %v5007_v50 = vld [vmem:[%s7866_s1 + $0xc4] sm:$0xf] }
  0x14   :  { %v3810_v54 = vld [vmem:[%s7866_s1 + $0x360] sm:$0xf]  ;;  %v5093_v55 = vld [vmem:[%s7866_s1 + $0x36c] sm:$0xf0]  ;;  %v3683_v58 = vor.u32 %v5061_v53, %v3682_v52  ;;  %1440 = vmatpush.bf16.msra.mxu0 %v3427_v56  ;;  %v3476_v51 = vld [vmem:[%s7866_s1 + $0xd0] sm:$0xf0] }
  0x15   :  { %v3410_v59 = vld [vmem:[%s7866_s1 + $0x40] sm:$0xf]  ;;  %v4993_v60 = vld [vmem:[%s7866_s1 + $0x4c] sm:$0xf0]  ;;  %v3811_v62 = vor.u32 %v5093_v55, %v3810_v54  ;;  %1454 = vmatpush.bf16.msra.mxu1 %v3555_v57  ;;  %v4979_v53 = vld [vmem:[%s7867_s0 + $0x18] sm:$0xf0] }
  0x16   :  { %v3538_v61 = vld [vmem:[%s7866_s1 + $0x140] sm:$0xf]  ;;  %v5025_v63 = vld [vmem:[%s7866_s1 + $0x14c] sm:$0xf0]  ;;  %v3411_v4 = vor.u32 %v4993_v60, %v3410_v59  ;;  %1468 = vmatpush.bf16.msra.mxu2 %v3683_v58  ;;  %v3358_v54 = vld [vmem:[%s7867_s0 + $0x8] sm:$0xf] }
  0x17   :  { %v3666_v0 = vld [vmem:[%s7866_s1 + $0x240] sm:$0xf]  ;;  %v5057_v1 = vld [vmem:[%s7866_s1 + $0x24c] sm:$0xf0]  ;;  %v3539_v5 = vor.u32 %v5025_v63, %v3538_v61  ;;  %1482 = vmatpush.bf16.msra.mxu3 %v3811_v62  ;;  %v4980_v58 = vld [vmem:[%s7867_s0 + $0x20] sm:$0xf0] }
  0x18   :  { %v3794_v2 = vld [vmem:[%s7866_s1 + $0x340] sm:$0xf]  ;;  %v5089_v3 = vld [vmem:[%s7866_s1 + $0x34c] sm:$0xf0]  ;;  %v3667_v6 = vor.u32 %v5057_v1, %v3666_v0  ;;  %1441 = vmatpush.bf16.msra.mxu0 %v3411_v4  ;;  %v5718_v0 = vor.u32 %v4980_v58, %v3358_v54  ;;  %v3479_v1 = vor.u32 %v5007_v50, %v3476_v51  ;;  %v5003_v4 = vld [vmem:[%s7866_s1 + $0xa4] sm:$0xf] }
  0x19   :  { %v3394_v7 = vld [vmem:[%s7866_s1 + $0x20] sm:$0xf]  ;;  %v4989_v8 = vld [vmem:[%s7866_s1 + $0x2c] sm:$0xf0]  ;;  %v3795_v10 = vor.u32 %v5089_v3, %v3794_v2  ;;  %1455 = vmatpush.bf16.msra.mxu1 %v3539_v5  ;;  %v3460_v5 = vld [vmem:[%s7866_s1 + $0xb0] sm:$0xf0] }
  0x1a   :  { %v3522_v9 = vld [vmem:[%s7866_s1 + $0x120] sm:$0xf]  ;;  %v5021_v11 = vld [vmem:[%s7866_s1 + $0x12c] sm:$0xf0]  ;;  %v3395_v16 = vor.u32 %v4989_v8, %v3394_v7  ;;  %1469 = vmatpush.bf16.msra.mxu2 %v3667_v6  ;;  %v4976_v6 = vld [vmem:[%s7867_s0 + $0x4] sm:$0xf] }
  0x1b   :  { %v3650_v12 = vld [vmem:[%s7866_s1 + $0x220] sm:$0xf]  ;;  %v5053_v13 = vld [vmem:[%s7866_s1 + $0x22c] sm:$0xf0]  ;;  %v3523_v19 = vor.u32 %v5021_v11, %v3522_v9  ;;  %1483 = vmatpush.bf16.msra.mxu3 %v3795_v10 }
  0x1c   :  { %v3778_v14 = vld [vmem:[%s7866_s1 + $0x320] sm:$0xf]  ;;  %v5085_v15 = vld [vmem:[%s7866_s1 + $0x32c] sm:$0xf0]  ;;  %v3651_v20 = vor.u32 %v5053_v13, %v3650_v12  ;;  %1442 = vmatpush.bf16.msra.mxu0 %v3395_v16 }
  0x1d   :  { %v3378_v17 = vld [vmem:[%s7866_s1] sm:$0xf]  ;;  %v4985_v18 = vld [vmem:[%s7866_s1 + $0xc] sm:$0xf0]  ;;  %v3779_v24 = vor.u32 %v5085_v15, %v3778_v14  ;;  %1456 = vmatpush.bf16.msra.mxu1 %v3523_v19  ;;  %v4977_v19 = vld [vmem:[%s7867_s0 + $0xc] sm:$0xf] }
  0x1e   :  { %v3506_v21 = vld [vmem:[%s7866_s1 + $0x100] sm:$0xf]  ;;  %v5017_v22 = vld [vmem:[%s7866_s1 + $0x10c] sm:$0xf0]  ;;  %v3379_v31 = vor.u32 %v4985_v18, %v3378_v17  ;;  %1470 = vmatpush.bf16.msra.mxu2 %v3651_v20  ;;  %v3463_v17 = vor.u32 %v5003_v4, %v3460_v5  ;;  %v3360_v20 = vld [vmem:[%s7867_s0 + $0x24] sm:$0xf0] }
  0x1f   :  { %v3634_v23 = vld [vmem:[%s7866_s1 + $0x200] sm:$0xf]  ;;  %v5049_v25 = vld [vmem:[%s7866_s1 + $0x20c] sm:$0xf0]  ;;  %v3507_v35 = vor.u32 %v5017_v22, %v3506_v21  ;;  %1484 = vmatpush.bf16.msra.mxu3 %v3779_v24  ;;  %v4999_v21 = vld [vmem:[%s7866_s1 + $0x84] sm:$0xf] }
  0x20   :  { %v3762_v26 = vld [vmem:[%s7866_s1 + $0x300] sm:$0xf]  ;;  %v5081_v27 = vld [vmem:[%s7866_s1 + $0x30c] sm:$0xf0]  ;;  %v3635_v36 = vor.u32 %v5049_v25, %v3634_v23  ;;  %1443 = vmatpush.bf16.msra.mxu0 %v3379_v31  ;;  %v3444_v22 = vld [vmem:[%s7866_s1 + $0x90] sm:$0xf0]  ;;  %v5773_v23 = vor.u32 %v4977_v19, %v3360_v20 }
  0x21   :  { %v4002_v28 = vld [vmem:[%s7866_s1 + $0x4e0] sm:$0xf]  ;;  %v5141_v29 = vld [vmem:[%s7866_s1 + $0x4ec] sm:$0xf0]  ;;  %v3763_v39 = vor.u32 %v5081_v27, %v3762_v26  ;;  %1457 = vmatpush.bf16.msra.mxu1 %v3507_v35  ;;  %v3428_v35 = vld [vmem:[%s7866_s1 + $0x70] sm:$0xf0] }
  0x22   :  { %v4130_v30 = vld [vmem:[%s7866_s1 + $0x5e0] sm:$0xf]  ;;  %v5173_v32 = vld [vmem:[%s7866_s1 + $0x5ec] sm:$0xf0]  ;;  %v4003_v40 = vor.u32 %v5141_v29, %v4002_v28  ;;  %1471 = vmatpush.bf16.msra.mxu2 %v3635_v36  ;;  %v4004_v19 = vld [vmem:[%s7866_s1 + $0x4f0] sm:$0xf0] }
  0x23   :  { %v4258_v33 = vld [vmem:[%s7866_s1 + $0x6e0] sm:$0xf]  ;;  %v5205_v34 = vld [vmem:[%s7866_s1 + $0x6ec] sm:$0xf0]  ;;  %v4131_v43 = vor.u32 %v5173_v32, %v4130_v30  ;;  %1485 = vmatpush.bf16.msra.mxu3 %v3763_v39  ;;  %v3447_v30 = vor.u32 %v4999_v21, %v3444_v22 }
  0x24   :  { %v3986_v41 = vld [vmem:[%s7866_s1 + $0x4c0] sm:$0xf]  ;;  %v5137_v42 = vld [vmem:[%s7866_s1 + $0x4cc] sm:$0xf0]  ;;  %v4259_v44 = vor.u32 %v5205_v34, %v4258_v33  ;;  %1492 = vmatpush.bf16.msrb.mxu0 %v4003_v40  ;;  %v4995_v34 = vld [vmem:[%s7866_s1 + $0x64] sm:$0xf] }
  0x25   :  { %v4114_v45 = vld [vmem:[%s7866_s1 + $0x5c0] sm:$0xf]  ;;  %v5169_v46 = vld [vmem:[%s7866_s1 + $0x5cc] sm:$0xf0]  ;;  %v3987_v55 = vor.u32 %v5137_v42, %v3986_v41  ;;  %1506 = vmatpush.bf16.msrb.mxu1 %v4131_v43  ;;  %1472 = vmatmul.bf16.vlgmr.msra.gmra.mxu2 %v5718_v0  ;;  %v3431_v42 = vor.u32 %v4995_v34, %v3428_v35  ;;  %v3604_v34 = vld [vmem:[%s7866_s1 + $0x1d0] sm:$0xf0] }
  0x26   :  { %v4242_v47 = vld [vmem:[%s7866_s1 + $0x6c0] sm:$0xf]  ;;  %v5201_v49 = vld [vmem:[%s7866_s1 + $0x6cc] sm:$0xf0]  ;;  %1520 = vmatpush.bf16.msrb.mxu2 %v4259_v44  ;;  %v4115_v59 = vor.u32 %v5169_v46, %v4114_v45  ;;  %1486 = vmatmul.bf16.vlgmr.msra.gmra.mxu3 %v5773_v23  ;;  %v4991_v46 = vld [vmem:[%s7866_s1 + $0x44] sm:$0xf] }
  0x27   :  { %v3350_v52 = vld [vmem:[%s7867_s0] sm:$0xf]  ;;  %v4243_v60 = vor.u32 %v5201_v49, %v4242_v47  ;;  %v5133_v61 = vld [vmem:[%s7866_s1 + $0x4ac] sm:$0xf0]  ;;  %1534 = vmatpush.bf16.msrb.mxu3 %v3495_v48  ;;  %v3412_v47 = vld [vmem:[%s7866_s1 + $0x50] sm:$0xf0] }
  0x28   :  { %v3970_v56 = vld [vmem:[%s7866_s1 + $0x4a0] sm:$0xf]  ;;  %v5704_v57 = vor.u32 %v4979_v53, %v3350_v52  ;;  %v5165_v63 = vld [vmem:[%s7866_s1 + $0x5ac] sm:$0xf0]  ;;  %1493 = vmatpush.bf16.msrb.mxu0 %v3987_v55  ;;  %v3415_v54 = vor.u32 %v4991_v46, %v3412_v47  ;;  %v5071_v35 = vld [vmem:[%s7866_s1 + $0x2c4] sm:$0xf] }
  0x29   :  { %v4098_v62 = vld [vmem:[%s7866_s1 + $0x5a0] sm:$0xf]  ;;  %v5197_v3 = vld [vmem:[%s7866_s1 + $0x6ac] sm:$0xf0]  ;;  %v3971_v8 = vor.u32 %v5133_v61, %v3970_v56  ;;  %1507 = vmatpush.bf16.msrb.mxu1 %v4115_v59  ;;  %v4987_v59 = vld [vmem:[%s7866_s1 + $0x24] sm:$0xf] }
  0x2a   :  { %v4226_v2 = vld [vmem:[%s7866_s1 + $0x6a0] sm:$0xf]  ;;  %1444 = vmatmul.bf16.vlgmr.msra.gmra.mxu0 %v5704_v57  ;;  %v5129_v10 = vld [vmem:[%s7866_s1 + $0x48c] sm:$0xf0]  ;;  %1521 = vmatpush.bf16.msrb.mxu2 %v4243_v60  ;;  %v4099_v12 = vor.u32 %v5165_v63, %v4098_v62  ;;  %v3396_v60 = vld [vmem:[%s7866_s1 + $0x30] sm:$0xf0] }
  0x2b   :  { %v3352_v7 = vld [vmem:[%s7867_s0 + $0x1c] sm:$0xf0]  ;;  %v4227_v13 = vor.u32 %v5197_v3, %v4226_v2  ;;  %v5161_v15 = vld [vmem:[%s7866_s1 + $0x58c] sm:$0xf0]  ;;  %1535 = vmatpush.bf16.msrb.mxu3 %v3479_v1 }
  0x2c   :  { %v3954_v9 = vld [vmem:[%s7866_s1 + $0x480] sm:$0xf]  ;;  %v5746_v11 = vor.u32 %v4976_v6, %v3352_v7  ;;  %v5193_v18 = vld [vmem:[%s7866_s1 + $0x68c] sm:$0xf0]  ;;  %1494 = vmatpush.bf16.msrb.mxu0 %v3971_v8  ;;  %v4983_v7 = vld [vmem:[%s7866_s1 + $0x4] sm:$0xf]  ;;  %v3399_v8 = vor.u32 %v4987_v59, %v3396_v60 }
  0x2d   :  { %v4082_v14 = vld [vmem:[%s7866_s1 + $0x580] sm:$0xf]  ;;  %v3955_v24 = vor.u32 %v5129_v10, %v3954_v9  ;;  %1508 = vmatpush.bf16.msrb.mxu1 %v4099_v12  ;;  %v5125_v28 = vld [vmem:[%s7866_s1 + $0x46c] sm:$0xf0]  ;;  %v3380_v9 = vld [vmem:[%s7866_s1 + $0x10] sm:$0xf0] }
  0x2e   :  { %v4210_v16 = vld [vmem:[%s7866_s1 + $0x680] sm:$0xf]  ;;  %1458 = vmatmul.bf16.vlgmr.msra.gmra.mxu1 %v5746_v11  ;;  %1522 = vmatpush.bf16.msrb.mxu2 %v4227_v13  ;;  %v4083_v25 = vor.u32 %v5161_v15, %v4082_v14  ;;  %v5157_v31 = vld [vmem:[%s7866_s1 + $0x56c] sm:$0xf0]  ;;  %v5043_v10 = vld [vmem:[%s7866_s1 + $0x1e4] sm:$0xf] }
  0x2f   :  { %v4211_v26 = vor.u32 %v5193_v18, %v4210_v16  ;;  %v3938_v27 = vld [vmem:[%s7866_s1 + $0x460] sm:$0xf]  ;;  %1536 = vmatpush.bf16.msrb.mxu3 %v3463_v17  ;;  %v5189_v33 = vld [vmem:[%s7866_s1 + $0x66c] sm:$0xf0]  ;;  %v3620_v12 = vld [vmem:[%s7866_s1 + $0x1f0] sm:$0xf0] }
  0x30   :  { %v4066_v29 = vld [vmem:[%s7866_s1 + $0x560] sm:$0xf]  ;;  %1495 = vmatpush.bf16.msrb.mxu0 %v3955_v24  ;;  %v3939_v36 = vor.u32 %v5125_v28, %v3938_v27  ;;  %v5121_v40 = vld [vmem:[%s7866_s1 + $0x44c] sm:$0xf0]  ;;  %v5075_v13 = vld [vmem:[%s7866_s1 + $0x2e4] sm:$0xf]  ;;  %v3623_v27 = vor.u32 %v5043_v10, %v3620_v12 }
  0x31   :  { %v4194_v32 = vld [vmem:[%s7866_s1 + $0x660] sm:$0xf]  ;;  %1509 = vmatpush.bf16.msrb.mxu1 %v4083_v25  ;;  %v4067_v37 = vor.u32 %v5157_v31, %v4066_v29  ;;  %v5153_v43 = vld [vmem:[%s7866_s1 + $0x54c] sm:$0xf0]  ;;  %v3748_v14 = vld [vmem:[%s7866_s1 + $0x2f0] sm:$0xf0] }
  0x32   :  { %1523 = vmatpush.bf16.msrb.mxu2 %v4211_v26  ;;  %v4195_v38 = vor.u32 %v5189_v33, %v4194_v32  ;;  %v3922_v39 = vld [vmem:[%s7866_s1 + $0x440] sm:$0xf]  ;;  %v5185_v45 = vld [vmem:[%s7866_s1 + $0x64c] sm:$0xf0]  ;;  %v5107_v15 = vld [vmem:[%s7866_s1 + $0x3e4] sm:$0xf]  ;;  %v3383_v26 = vor.u32 %v4983_v7, %v3380_v9  ;;  %v3751_v31 = vor.u32 %v5075_v13, %v3748_v14 }
  0x33   :  { %v4050_v41 = vld [vmem:[%s7866_s1 + $0x540] sm:$0xf]  ;;  %1537 = vmatpush.bf16.msrb.mxu3 %v3447_v30  ;;  %v3923_v48 = vor.u32 %v5121_v40, %v3922_v39  ;;  %v5117_v52 = vld [vmem:[%s7866_s1 + $0x42c] sm:$0xf0]  ;;  %v3876_v17 = vld [vmem:[%s7866_s1 + $0x3f0] sm:$0xf0] }
  0x34   :  { %v4178_v44 = vld [vmem:[%s7866_s1 + $0x640] sm:$0xf]  ;;  %1496 = vmatpush.bf16.msrb.mxu0 %v3939_v36  ;;  %v4051_v49 = vor.u32 %v5153_v43, %v4050_v41  ;;  %v5149_v55 = vld [vmem:[%s7866_s1 + $0x52c] sm:$0xf0]  ;;  %v5139_v18 = vld [vmem:[%s7866_s1 + $0x4e4] sm:$0xf]  ;;  %v3879_v32 = vor.u32 %v5107_v15, %v3876_v17 }
  0x35   :  { %1510 = vmatpush.bf16.msrb.mxu1 %v4067_v37  ;;  %v4179_v50 = vor.u32 %v5185_v45, %v4178_v44  ;;  %v3906_v51 = vld [vmem:[%s7866_s1 + $0x420] sm:$0xf]  ;;  %v5181_v58 = vld [vmem:[%s7866_s1 + $0x62c] sm:$0xf0]  ;;  %v4981_v24 = vld [vmem:[%s7867_s0 + $0x28] sm:$0xf0]  ;;  %v4007_v36 = vor.u32 %v5139_v18, %v4004_v19 }
  0x36   :  { %1524 = vmatpush.bf16.msrb.mxu2 %v4195_v38  ;;  %v4034_v53 = vld [vmem:[%s7866_s1 + $0x520] sm:$0xf]  ;;  %v3907_v62 = vor.u32 %v5117_v52, %v3906_v51  ;;  %v5113_v63 = vld [vmem:[%s7866_s1 + $0x40c] sm:$0xf0]  ;;  %v3374_v25 = vld [vmem:[%s7867_s0 + $0x18] sm:$0xf] }
  0x37   :  { %1538 = vmatpush.bf16.msrb.mxu3 %v3431_v42  ;;  %v4162_v56 = vld [vmem:[%s7866_s1 + $0x620] sm:$0xf]  ;;  %v5145_v2 = vld [vmem:[%s7866_s1 + $0x50c] sm:$0xf0]  ;;  %v4035_v3 = vor.u32 %v5149_v55, %v4034_v53  ;;  %v4982_v28 = vld [vmem:[%s7867_s0 + $0x30] sm:$0xf0] }
  0x38   :  { %v3890_v61 = vld [vmem:[%s7866_s1 + $0x400] sm:$0xf]  ;;  %1497 = vmatpush.bf16.msrb.mxu0 %v3923_v48  ;;  %v4163_v4 = vor.u32 %v5181_v58, %v4162_v56  ;;  %v5177_v6 = vld [vmem:[%s7866_s1 + $0x60c] sm:$0xf0]  ;;  %v4978_v29 = vld [vmem:[%s7867_s0 + $0x14] sm:$0xf]  ;;  %v5934_v41 = vor.u32 %v4982_v28, %v3374_v25 }
  0x39   :  { %v4018_v1 = vld [vmem:[%s7866_s1 + $0x500] sm:$0xf]  ;;  %1511 = vmatpush.bf16.msrb.mxu1 %v4051_v49  ;;  %v3891_v16 = vor.u32 %v5113_v63, %v3890_v61  ;;  %v3366_v22 = vld [vmem:[%s7867_s0 + $0x10] sm:$0xf]  ;;  %v5039_v33 = vld [vmem:[%s7866_s1 + $0x1c4] sm:$0xf] }
  0x3a   :  { %1525 = vmatpush.bf16.msrb.mxu2 %v4179_v50  ;;  %v4146_v5 = vld [vmem:[%s7866_s1 + $0x600] sm:$0xf]  ;;  %v4019_v20 = vor.u32 %v5145_v2, %v4018_v1  ;;  %v3368_v30 = vld [vmem:[%s7867_s0 + $0x2c] sm:$0xf0]  ;;  %v5923_v37 = vor.u32 %v4981_v24, %v3366_v22  ;;  %v3732_v38 = vld [vmem:[%s7866_s1 + $0x2d0] sm:$0xf0]  ;;  %v3607_v45 = vor.u32 %v5039_v33, %v3604_v34 }
  0x3b   :  { %1539 = vmatpush.bf16.msrb.mxu3 %v3415_v54  ;;  %v4147_v21 = vor.u32 %v5177_v6, %v4146_v5  ;;  %v5103_v39 = vld [vmem:[%s7866_s1 + $0x3c4] sm:$0xf]  ;;  %v3860_v40 = vld [vmem:[%s7866_s1 + $0x3d0] sm:$0xf0]  ;;  %v5936_v42 = vor.u32 %v4978_v29, %v3368_v30  ;;  %v3735_v46 = vor.u32 %v5071_v35, %v3732_v38 }
  0x3c   :  { %1498 = vmatpush.bf16.msrb.mxu0 %v3907_v62  ;;  %v5135_v43 = vld [vmem:[%s7866_s1 + $0x4c4] sm:$0xf]  ;;  %v3988_v44 = vld [vmem:[%s7866_s1 + $0x4d0] sm:$0xf0]  ;;  %v3863_v47 = vor.u32 %v5103_v39, %v3860_v40 }
  0x3d   :  { %1512 = vmatpush.bf16.msrb.mxu1 %v4035_v3  ;;  %v5035_v48 = vld [vmem:[%s7866_s1 + $0x1a4] sm:$0xf]  ;;  %v3588_v49 = vld [vmem:[%s7866_s1 + $0x1b0] sm:$0xf0]  ;;  %v3991_v51 = vor.u32 %v5135_v43, %v3988_v44 }
  0x3e   :  { %1526 = vmatpush.bf16.msrb.mxu2 %v4163_v4  ;;  %v5067_v50 = vld [vmem:[%s7866_s1 + $0x2a4] sm:$0xf]  ;;  %v3716_v52 = vld [vmem:[%s7866_s1 + $0x2b0] sm:$0xf0]  ;;  %v3591_v58 = vor.u32 %v5035_v48, %v3588_v49 }
  0x3f   :  { %1540 = vmatpush.bf16.msrb.mxu3 %v3399_v8  ;;  %v5099_v53 = vld [vmem:[%s7866_s1 + $0x3a4] sm:$0xf]  ;;  %v3844_v54 = vld [vmem:[%s7866_s1 + $0x3b0] sm:$0xf0]  ;;  %v3719_v59 = vor.u32 %v5067_v50, %v3716_v52 }
  0x40   :  { %1499 = vmatpush.bf16.msrb.mxu0 %v3891_v16  ;;  %v5131_v55 = vld [vmem:[%s7866_s1 + $0x4a4] sm:$0xf]  ;;  %v3972_v56 = vld [vmem:[%s7866_s1 + $0x4b0] sm:$0xf0]  ;;  %v3847_v60 = vor.u32 %v5099_v53, %v3844_v54 }
  0x41   :  { %1513 = vmatpush.bf16.msrb.mxu1 %v4019_v20  ;;  %v5031_v61 = vld [vmem:[%s7866_s1 + $0x184] sm:$0xf]  ;;  %v3572_v62 = vld [vmem:[%s7866_s1 + $0x190] sm:$0xf0]  ;;  %v3975_v1 = vor.u32 %v5131_v55, %v3972_v56 }
  0x42   :  { %1527 = vmatpush.bf16.msrb.mxu2 %v4147_v21  ;;  %v5063_v63 = vld [vmem:[%s7866_s1 + $0x284] sm:$0xf]  ;;  %v3700_v2 = vld [vmem:[%s7866_s1 + $0x290] sm:$0xf0]  ;;  %v3575_v7 = vor.u32 %v5031_v61, %v3572_v62 }
  0x43   :  { %1541 = vmatpush.bf16.msrb.mxu3 %v3383_v26  ;;  %1500 = vmatmul.bf16.vlgmr.msrb.gmra.mxu0 %v5923_v37  ;;  %v5095_v3 = vld [vmem:[%s7866_s1 + $0x384] sm:$0xf]  ;;  %v3828_v4 = vld [vmem:[%s7866_s1 + $0x390] sm:$0xf0]  ;;  %v3703_v8 = vor.u32 %v5063_v63, %v3700_v2 }
  0x44   :  { %1548 = vmatpush.bf16.msra.mxu0 %v3623_v27  ;;  %1514 = vmatmul.bf16.vlgmr.msrb.gmra.mxu1 %v5936_v42  ;;  %v5127_v5 = vld [vmem:[%s7866_s1 + $0x484] sm:$0xf]  ;;  %v3956_v6 = vld [vmem:[%s7866_s1 + $0x490] sm:$0xf0]  ;;  %v3831_v9 = vor.u32 %v5095_v3, %v3828_v4  ;;  %v3498_v3 = vld [vmem:[%s7866_s1 + $0xe8] sm:$0xf] }
  0x45   :  { %1562 = vmatpush.bf16.msra.mxu1 %v3751_v31  ;;  %1528 = vmatmul.bf16.vlgmr.msrb.gmra.mxu2 %v5934_v41  ;;  %v5027_v10 = vld [vmem:[%s7866_s1 + $0x164] sm:$0xf]  ;;  %v3556_v12 = vld [vmem:[%s7866_s1 + $0x170] sm:$0xf0]  ;;  %v3959_v14 = vor.u32 %v5127_v5, %v3956_v6  ;;  %v5014_v4 = vld [vmem:[%s7866_s1 + $0xf4] sm:$0xf0] }
  0x46   :  { %1576 = vmatpush.bf16.msra.mxu2 %v3879_v32  ;;  %1542 = vmatmul.bf16.vlgmr.msrb.gmra.mxu3 %v5704_v57  ;;  %v5059_v13 = vld [vmem:[%s7866_s1 + $0x264] sm:$0xf]  ;;  %v3684_v15 = vld [vmem:[%s7866_s1 + $0x270] sm:$0xf0]  ;;  %v3559_v20 = vor.u32 %v5027_v10, %v3556_v12 }
  0x47   :  { %1590 = vmatpush.bf16.msra.mxu3 %v4007_v36  ;;  %v5091_v16 = vld [vmem:[%s7866_s1 + $0x364] sm:$0xf]  ;;  %v3812_v17 = vld [vmem:[%s7866_s1 + $0x370] sm:$0xf0]  ;;  %v3687_v21 = vor.u32 %v5059_v13, %v3684_v15  ;;  %v3499_v13 = vor.u32 %v5014_v4, %v3498_v3 }
  0x48   :  { %1549 = vmatpush.bf16.msra.mxu0 %v3607_v45  ;;  %v5123_v18 = vld [vmem:[%s7866_s1 + $0x464] sm:$0xf]  ;;  %v3940_v19 = vld [vmem:[%s7866_s1 + $0x470] sm:$0xf0]  ;;  %v3815_v22 = vor.u32 %v5091_v16, %v3812_v17 }
  0x49   :  { %1563 = vmatpush.bf16.msra.mxu1 %v3735_v46  ;;  %v5023_v24 = vld [vmem:[%s7866_s1 + $0x144] sm:$0xf]  ;;  %v3540_v25 = vld [vmem:[%s7866_s1 + $0x150] sm:$0xf0]  ;;  %v3943_v27 = vor.u32 %v5123_v18, %v3940_v19  ;;  %v3482_v19 = vld [vmem:[%s7866_s1 + $0xc8] sm:$0xf] }
  0x4a   :  { %1577 = vmatpush.bf16.msra.mxu2 %v3863_v47  ;;  %v5055_v26 = vld [vmem:[%s7866_s1 + $0x244] sm:$0xf]  ;;  %v3668_v28 = vld [vmem:[%s7866_s1 + $0x250] sm:$0xf0]  ;;  %v3543_v33 = vor.u32 %v5023_v24, %v3540_v25 }
  0x4b   :  { %1591 = vmatpush.bf16.msra.mxu3 %v3991_v51  ;;  %v5087_v29 = vld [vmem:[%s7866_s1 + $0x344] sm:$0xf]  ;;  %v3796_v30 = vld [vmem:[%s7866_s1 + $0x350] sm:$0xf0]  ;;  %v3671_v34 = vor.u32 %v5055_v26, %v3668_v28 }
  0x4c   :  { %1550 = vmatpush.bf16.msra.mxu0 %v3591_v58  ;;  %v5119_v31 = vld [vmem:[%s7866_s1 + $0x444] sm:$0xf]  ;;  %v3924_v32 = vld [vmem:[%s7866_s1 + $0x450] sm:$0xf0]  ;;  %v3799_v35 = vor.u32 %v5087_v29, %v3796_v30 }
  0x4d   :  { %1564 = vmatpush.bf16.msra.mxu1 %v3719_v59  ;;  %v5019_v36 = vld [vmem:[%s7866_s1 + $0x124] sm:$0xf]  ;;  %v3524_v38 = vld [vmem:[%s7866_s1 + $0x130] sm:$0xf0]  ;;  %v3927_v40 = vor.u32 %v5119_v31, %v3924_v32  ;;  %v3466_v32 = vld [vmem:[%s7866_s1 + $0xa8] sm:$0xf] }
  0x4e   :  { %1578 = vmatpush.bf16.msra.mxu2 %v3847_v60  ;;  %v5051_v39 = vld [vmem:[%s7866_s1 + $0x224] sm:$0xf]  ;;  %v3652_v43 = vld [vmem:[%s7866_s1 + $0x230] sm:$0xf0]  ;;  %v3527_v48 = vor.u32 %v5019_v36, %v3524_v38 }
  0x4f   :  { %1592 = vmatpush.bf16.msra.mxu3 %v3975_v1  ;;  %v5083_v44 = vld [vmem:[%s7866_s1 + $0x324] sm:$0xf]  ;;  %v3780_v45 = vld [vmem:[%s7866_s1 + $0x330] sm:$0xf0]  ;;  %v3655_v51 = vor.u32 %v5051_v39, %v3652_v43 }
  0x50   :  { %1551 = vmatpush.bf16.msra.mxu0 %v3575_v7  ;;  %v5115_v46 = vld [vmem:[%s7866_s1 + $0x424] sm:$0xf]  ;;  %v3908_v47 = vld [vmem:[%s7866_s1 + $0x430] sm:$0xf0]  ;;  %v3783_v52 = vor.u32 %v5083_v44, %v3780_v45  ;;  %v3626_v7 = vld [vmem:[%s7866_s1 + $0x1e8] sm:$0xf] }
  0x51   :  { %1565 = vmatpush.bf16.msra.mxu1 %v3703_v8  ;;  %v5015_v49 = vld [vmem:[%s7866_s1 + $0x104] sm:$0xf]  ;;  %v3508_v50 = vld [vmem:[%s7866_s1 + $0x110] sm:$0xf0]  ;;  %v3911_v56 = vor.u32 %v5115_v46, %v3908_v47  ;;  %v5046_v8 = vld [vmem:[%s7866_s1 + $0x1f4] sm:$0xf0] }
  0x52   :  { %1579 = vmatpush.bf16.msra.mxu2 %v3831_v9  ;;  %v5047_v53 = vld [vmem:[%s7866_s1 + $0x204] sm:$0xf]  ;;  %v3636_v54 = vld [vmem:[%s7866_s1 + $0x210] sm:$0xf0]  ;;  %v3511_v1 = vor.u32 %v5015_v49, %v3508_v50  ;;  %v3627_v17 = vor.u32 %v5046_v8, %v3626_v7  ;;  %v3450_v47 = vld [vmem:[%s7866_s1 + $0x88] sm:$0xf] }
  0x53   :  { %1593 = vmatpush.bf16.msra.mxu3 %v3959_v14  ;;  %v5079_v55 = vld [vmem:[%s7866_s1 + $0x304] sm:$0xf]  ;;  %v3764_v58 = vld [vmem:[%s7866_s1 + $0x310] sm:$0xf0]  ;;  %v3639_v5 = vor.u32 %v5047_v53, %v3636_v54  ;;  %v3578_v49 = vld [vmem:[%s7866_s1 + $0x188] sm:$0xf] }
  0x54   :  { %1552 = vmatpush.bf16.msra.mxu0 %v3559_v20  ;;  %v5111_v59 = vld [vmem:[%s7866_s1 + $0x404] sm:$0xf]  ;;  %v3892_v60 = vld [vmem:[%s7866_s1 + $0x410] sm:$0xf0]  ;;  %v3767_v6 = vor.u32 %v5079_v55, %v3764_v58  ;;  %v5010_v20 = vld [vmem:[%s7866_s1 + $0xd4] sm:$0xf0] }
  0x55   :  { %1566 = vmatpush.bf16.msra.mxu1 %v3687_v21  ;;  %v5171_v61 = vld [vmem:[%s7866_s1 + $0x5e4] sm:$0xf]  ;;  %v4132_v62 = vld [vmem:[%s7866_s1 + $0x5f0] sm:$0xf0]  ;;  %v3895_v9 = vor.u32 %v5111_v59, %v3892_v60  ;;  %v3610_v21 = vld [vmem:[%s7866_s1 + $0x1c8] sm:$0xf]  ;;  %v3483_v26 = vor.u32 %v5010_v20, %v3482_v19 }
  0x56   :  { %1580 = vmatpush.bf16.msra.mxu2 %v3815_v22  ;;  %v5203_v63 = vld [vmem:[%s7866_s1 + $0x6e4] sm:$0xf]  ;;  %v4260_v2 = vld [vmem:[%s7866_s1 + $0x6f0] sm:$0xf0]  ;;  %v4135_v10 = vor.u32 %v5171_v61, %v4132_v62  ;;  %v5042_v22 = vld [vmem:[%s7866_s1 + $0x1d4] sm:$0xf0] }
  0x57   :  { %1594 = vmatpush.bf16.msra.mxu3 %v3943_v27  ;;  %v4263_v12 = vor.u32 %v5203_v63, %v4260_v2  ;;  %v5167_v14 = vld [vmem:[%s7866_s1 + $0x5c4] sm:$0xf]  ;;  %v4116_v15 = vld [vmem:[%s7866_s1 + $0x5d0] sm:$0xf0]  ;;  %v3611_v30 = vor.u32 %v5042_v22, %v3610_v21  ;;  %v5034_v50 = vld [vmem:[%s7866_s1 + $0x194] sm:$0xf0] }
  0x58   :  { %1553 = vmatpush.bf16.msra.mxu0 %v3543_v33  ;;  %v5199_v16 = vld [vmem:[%s7866_s1 + $0x6c4] sm:$0xf]  ;;  %v4244_v18 = vld [vmem:[%s7866_s1 + $0x6d0] sm:$0xf0]  ;;  %v4119_v24 = vor.u32 %v5167_v14, %v4116_v15  ;;  %v5006_v33 = vld [vmem:[%s7866_s1 + $0xb4] sm:$0xf0]  ;;  %v3579_v58 = vor.u32 %v5034_v50, %v3578_v49 }
  0x59   :  { %1567 = vmatpush.bf16.msra.mxu1 %v3671_v34  ;;  %v4247_v25 = vor.u32 %v5199_v16, %v4244_v18  ;;  %v5163_v27 = vld [vmem:[%s7866_s1 + $0x5a4] sm:$0xf]  ;;  %v4100_v28 = vld [vmem:[%s7866_s1 + $0x5b0] sm:$0xf0]  ;;  %v3594_v34 = vld [vmem:[%s7866_s1 + $0x1a8] sm:$0xf]  ;;  %v3467_v39 = vor.u32 %v5006_v33, %v3466_v32 }
  0x5a   :  { %1581 = vmatpush.bf16.msra.mxu2 %v3799_v35  ;;  %v5195_v29 = vld [vmem:[%s7866_s1 + $0x6a4] sm:$0xf]  ;;  %v4228_v31 = vld [vmem:[%s7866_s1 + $0x6b0] sm:$0xf0]  ;;  %v5038_v35 = vld [vmem:[%s7866_s1 + $0x1b4] sm:$0xf0]  ;;  %v4103_v36 = vor.u32 %v5163_v27, %v4100_v28 }
  0x5b   :  { %1595 = vmatpush.bf16.msra.mxu3 %v3927_v40  ;;  %v4231_v38 = vor.u32 %v5195_v29, %v4228_v31  ;;  %v5159_v40 = vld [vmem:[%s7866_s1 + $0x584] sm:$0xf]  ;;  %v4084_v43 = vld [vmem:[%s7866_s1 + $0x590] sm:$0xf0]  ;;  %v3595_v45 = vor.u32 %v5038_v35, %v3594_v34  ;;  %v3434_v60 = vld [vmem:[%s7866_s1 + $0x68] sm:$0xf] }
  0x5c   :  { %1554 = vmatpush.bf16.msra.mxu0 %v3527_v48  ;;  %v5191_v44 = vld [vmem:[%s7866_s1 + $0x684] sm:$0xf]  ;;  %v4212_v46 = vld [vmem:[%s7866_s1 + $0x690] sm:$0xf0]  ;;  %v5002_v48 = vld [vmem:[%s7866_s1 + $0x94] sm:$0xf0] }
  0x5d   :  { %1568 = vmatpush.bf16.msra.mxu1 %v3655_v51  ;;  %v4087_v51 = vor.u32 %v5159_v40, %v4084_v43  ;;  %v3451_v53 = vor.u32 %v5002_v48, %v3450_v47  ;;  %v5155_v54 = vld [vmem:[%s7866_s1 + $0x564] sm:$0xf]  ;;  %v4068_v55 = vld [vmem:[%s7866_s1 + $0x570] sm:$0xf0]  ;;  %v4998_v61 = vld [vmem:[%s7866_s1 + $0x74] sm:$0xf0] }
  0x5e   :  { %1582 = vmatpush.bf16.msra.mxu2 %v3783_v52  ;;  %v4215_v52 = vor.u32 %v5191_v44, %v4212_v46  ;;  %v4196_v59 = vld [vmem:[%s7866_s1 + $0x670] sm:$0xf0]  ;;  %v3562_v62 = vld [vmem:[%s7866_s1 + $0x168] sm:$0xf]  ;;  %v5030_v63 = vld [vmem:[%s7866_s1 + $0x174] sm:$0xf0]  ;;  %v3435_v3 = vor.u32 %v4998_v61, %v3434_v60 }
  0x5f   :  { %1596 = vmatpush.bf16.msra.mxu3 %v3911_v56  ;;  %v5187_v56 = vld [vmem:[%s7866_s1 + $0x664] sm:$0xf]  ;;  %v3563_v7 = vor.u32 %v5030_v63, %v3562_v62  ;;  %v4180_v8 = vld [vmem:[%s7866_s1 + $0x650] sm:$0xf0]  ;;  %v3402_v22 = vld [vmem:[%s7866_s1 + $0x28] sm:$0xf] }
  0x60   :  { %1555 = vmatpush.bf16.msra.mxu0 %v3511_v1  ;;  %v4071_v1 = vor.u32 %v5155_v54, %v4068_v55  ;;  %v4199_v2 = vor.u32 %v5187_v56, %v4196_v59  ;;  %v5151_v4 = vld [vmem:[%s7866_s1 + $0x544] sm:$0xf]  ;;  %v4036_v18 = vld [vmem:[%s7866_s1 + $0x530] sm:$0xf0]  ;;  %v3386_v34 = vld [vmem:[%s7866_s1 + $0x8] sm:$0xf] }
  0x61   :  { %1569 = vmatpush.bf16.msra.mxu1 %v3639_v5  ;;  %v4052_v5 = vld [vmem:[%s7866_s1 + $0x550] sm:$0xf0]  ;;  %v5179_v19 = vld [vmem:[%s7866_s1 + $0x624] sm:$0xf]  ;;  %v3754_v40 = vld [vmem:[%s7866_s1 + $0x2e8] sm:$0xf] }
  0x62   :  { %1583 = vmatpush.bf16.msra.mxu2 %v3767_v6  ;;  %v5183_v6 = vld [vmem:[%s7866_s1 + $0x644] sm:$0xf]  ;;  %v4055_v14 = vor.u32 %v5151_v4, %v4052_v5  ;;  %v4164_v21 = vld [vmem:[%s7866_s1 + $0x630] sm:$0xf0]  ;;  %v5078_v43 = vld [vmem:[%s7866_s1 + $0x2f4] sm:$0xf0] }
  0x63   :  { %1597 = vmatpush.bf16.msra.mxu3 %v3895_v9  ;;  %1556 = vmatmul.bf16.vlgmr.msra.gmra.mxu0 %v5746_v11  ;;  %v3418_v9 = vld [vmem:[%s7866_s1 + $0x48] sm:$0xf]  ;;  %v4183_v15 = vor.u32 %v5183_v6, %v4180_v8  ;;  %v5143_v28 = vld [vmem:[%s7866_s1 + $0x504] sm:$0xf]  ;;  %v4020_v29 = vld [vmem:[%s7866_s1 + $0x510] sm:$0xf0]  ;;  %v3755_v54 = vor.u32 %v5078_v43, %v3754_v40 }
  0x64   :  { %1604 = vmatpush.bf16.msrb.mxu0 %v4135_v10  ;;  %1570 = vmatmul.bf16.vlgmr.msra.gmra.mxu1 %v5718_v0  ;;  %v4994_v10 = vld [vmem:[%s7866_s1 + $0x54] sm:$0xf0]  ;;  %v5175_v32 = vld [vmem:[%s7866_s1 + $0x604] sm:$0xf]  ;;  %v4148_v33 = vld [vmem:[%s7866_s1 + $0x610] sm:$0xf0] }
  0x65   :  { %1618 = vmatpush.bf16.msrb.mxu1 %v4263_v12  ;;  %1584 = vmatmul.bf16.vlgmr.msra.gmra.mxu2 %v5773_v23  ;;  %v3546_v12 = vld [vmem:[%s7866_s1 + $0x148] sm:$0xf]  ;;  %v3419_v16 = vor.u32 %v4994_v10, %v3418_v9  ;;  %v5110_v46 = vld [vmem:[%s7866_s1 + $0x3f4] sm:$0xf0]  ;;  %v4151_v49 = vor.u32 %v5175_v32, %v4148_v33 }
  0x66   :  { %1632 = vmatpush.bf16.msrb.mxu2 %v3499_v13  ;;  %1598 = vmatmul.bf16.vlgmr.msra.gmra.mxu3 %v5923_v37  ;;  %v5026_v13 = vld [vmem:[%s7866_s1 + $0x154] sm:$0xf0]  ;;  %v3882_v44 = vld [vmem:[%s7866_s1 + $0x3e8] sm:$0xf] }
  0x67   :  { %1646 = vmatpush.bf16.msrb.mxu3 %v3627_v17  ;;  %v5147_v17 = vld [vmem:[%s7866_s1 + $0x524] sm:$0xf]  ;;  %v3547_v20 = vor.u32 %v5026_v13, %v3546_v12  ;;  %v4010_v47 = vld [vmem:[%s7866_s1 + $0x4e8] sm:$0xf]  ;;  %v5142_v48 = vld [vmem:[%s7866_s1 + $0x4f4] sm:$0xf0]  ;;  %v3883_v55 = vor.u32 %v5110_v46, %v3882_v44 }
  0x68   :  { %1605 = vmatpush.bf16.msrb.mxu0 %v4119_v24  ;;  %v4990_v24 = vld [vmem:[%s7866_s1 + $0x34] sm:$0xf0]  ;;  %v4039_v27 = vor.u32 %v5147_v17, %v4036_v18  ;;  %v4011_v56 = vor.u32 %v5142_v48, %v4010_v47  ;;  %v3866_v60 = vld [vmem:[%s7866_s1 + $0x3c8] sm:$0xf] }
  0x69   :  { %1619 = vmatpush.bf16.msrb.mxu1 %v4247_v25  ;;  %v3530_v25 = vld [vmem:[%s7866_s1 + $0x128] sm:$0xf]  ;;  %v3403_v31 = vor.u32 %v4990_v24, %v3402_v22  ;;  %v5074_v59 = vld [vmem:[%s7866_s1 + $0x2d4] sm:$0xf0] }
  0x6a   :  { %1633 = vmatpush.bf16.msrb.mxu2 %v3483_v26  ;;  %v5022_v26 = vld [vmem:[%s7866_s1 + $0x134] sm:$0xf0]  ;;  %v3994_v63 = vld [vmem:[%s7866_s1 + $0x4c8] sm:$0xf] }
  0x6b   :  { %1647 = vmatpush.bf16.msrb.mxu3 %v3611_v30  ;;  %v4167_v30 = vor.u32 %v5179_v19, %v4164_v21  ;;  %v3531_v35 = vor.u32 %v5022_v26, %v3530_v25  ;;  %v5106_v62 = vld [vmem:[%s7866_s1 + $0x3d4] sm:$0xf0]  ;;  %v3850_v9 = vld [vmem:[%s7866_s1 + $0x3a8] sm:$0xf] }
  0x6c   :  { %1606 = vmatpush.bf16.msrb.mxu0 %v4103_v36  ;;  %v4986_v36 = vld [vmem:[%s7866_s1 + $0x14] sm:$0xf0]  ;;  %v3867_v5 = vor.u32 %v5106_v62, %v3866_v60  ;;  %v3978_v13 = vld [vmem:[%s7866_s1 + $0x4a8] sm:$0xf] }
  0x6d   :  { %1620 = vmatpush.bf16.msrb.mxu1 %v4231_v38  ;;  %v3514_v38 = vld [vmem:[%s7866_s1 + $0x108] sm:$0xf]  ;;  %v3387_v50 = vor.u32 %v4986_v36, %v3386_v34  ;;  %v5070_v8 = vld [vmem:[%s7866_s1 + $0x2b4] sm:$0xf0] }
  0x6e   :  { %1634 = vmatpush.bf16.msrb.mxu2 %v3467_v39  ;;  %v5018_v39 = vld [vmem:[%s7866_s1 + $0x114] sm:$0xf0]  ;;  %v3834_v22 = vld [vmem:[%s7866_s1 + $0x388] sm:$0xf] }
  0x6f   :  { %1648 = vmatpush.bf16.msrb.mxu3 %v3595_v45  ;;  %v4023_v45 = vor.u32 %v5143_v28, %v4020_v29  ;;  %v5102_v12 = vld [vmem:[%s7866_s1 + $0x3b4] sm:$0xf0]  ;;  %v3962_v26 = vld [vmem:[%s7866_s1 + $0x488] sm:$0xf] }
  0x70   :  { %1607 = vmatpush.bf16.msrb.mxu0 %v4087_v51  ;;  %v4138_v51 = vld [vmem:[%s7866_s1 + $0x5e8] sm:$0xf]  ;;  %v3851_v18 = vor.u32 %v5102_v12, %v3850_v9  ;;  %v5066_v21 = vld [vmem:[%s7866_s1 + $0x294] sm:$0xf0] }
  0x71   :  { %1621 = vmatpush.bf16.msrb.mxu1 %v4215_v52  ;;  %v5174_v52 = vld [vmem:[%s7866_s1 + $0x5f4] sm:$0xf0]  ;;  %v4090_v28 = vld [vmem:[%s7866_s1 + $0x588] sm:$0xf] }
  0x72   :  { %1635 = vmatpush.bf16.msrb.mxu2 %v3451_v53  ;;  %v3515_v53 = vor.u32 %v5018_v39, %v3514_v38  ;;  %v4139_v61 = vor.u32 %v5174_v52, %v4138_v51  ;;  %v5098_v25 = vld [vmem:[%s7866_s1 + $0x394] sm:$0xf0]  ;;  %v3690_v33 = vld [vmem:[%s7866_s1 + $0x268] sm:$0xf] }
  0x73   :  { %1649 = vmatpush.bf16.msrb.mxu3 %v3579_v58  ;;  %v3738_v58 = vld [vmem:[%s7866_s1 + $0x2c8] sm:$0xf]  ;;  %v5162_v29 = vld [vmem:[%s7866_s1 + $0x594] sm:$0xf0] }
  0x74   :  { %1608 = vmatpush.bf16.msrb.mxu0 %v4071_v1  ;;  %v5138_v1 = vld [vmem:[%s7866_s1 + $0x4d4] sm:$0xf0]  ;;  %v3739_v4 = vor.u32 %v5074_v59, %v3738_v58  ;;  %v4091_v36 = vor.u32 %v5162_v29, %v4090_v28  ;;  %v3946_v39 = vld [vmem:[%s7866_s1 + $0x468] sm:$0xf] }
  0x75   :  { %1622 = vmatpush.bf16.msrb.mxu1 %v4199_v2  ;;  %v4122_v2 = vld [vmem:[%s7866_s1 + $0x5c8] sm:$0xf]  ;;  %v3995_v6 = vor.u32 %v5138_v1, %v3994_v63  ;;  %v5062_v34 = vld [vmem:[%s7866_s1 + $0x274] sm:$0xf0] }
  0x76   :  { %1636 = vmatpush.bf16.msrb.mxu2 %v3435_v3  ;;  %v5170_v3 = vld [vmem:[%s7866_s1 + $0x5d4] sm:$0xf0]  ;;  %v4074_v43 = vld [vmem:[%s7866_s1 + $0x568] sm:$0xf] }
  0x77   :  { %1650 = vmatpush.bf16.msrb.mxu3 %v3563_v7  ;;  %v3722_v7 = vld [vmem:[%s7866_s1 + $0x2a8] sm:$0xf]  ;;  %v4123_v10 = vor.u32 %v5170_v3, %v4122_v2  ;;  %v5094_v38 = vld [vmem:[%s7866_s1 + $0x374] sm:$0xf0] }
  0x78   :  { %1609 = vmatpush.bf16.msrb.mxu0 %v4055_v14  ;;  %v5134_v14 = vld [vmem:[%s7866_s1 + $0x4b4] sm:$0xf0]  ;;  %v3723_v17 = vor.u32 %v5070_v8, %v3722_v7  ;;  %v3674_v48 = vld [vmem:[%s7866_s1 + $0x248] sm:$0xf] }
  0x79   :  { %1623 = vmatpush.bf16.msrb.mxu1 %v4183_v15  ;;  %v4106_v15 = vld [vmem:[%s7866_s1 + $0x5a8] sm:$0xf]  ;;  %v3979_v19 = vor.u32 %v5134_v14, %v3978_v13  ;;  %v5126_v40 = vld [vmem:[%s7866_s1 + $0x474] sm:$0xf0] }
  0x7a   :  { %1637 = vmatpush.bf16.msrb.mxu2 %v3419_v16  ;;  %v5166_v16 = vld [vmem:[%s7866_s1 + $0x5b4] sm:$0xf0]  ;;  %v3947_v47 = vor.u32 %v5126_v40, %v3946_v39  ;;  %v3786_v63 = vld [vmem:[%s7866_s1 + $0x328] sm:$0xf]  ;;  %v5008_v39 = vld [vmem:[%s7866_s1 + $0xcc] sm:$0xf] }
  0x7b   :  { %1651 = vmatpush.bf16.msrb.mxu3 %v3547_v20  ;;  %v3706_v20 = vld [vmem:[%s7866_s1 + $0x288] sm:$0xf]  ;;  %v4107_v24 = vor.u32 %v5166_v16, %v4106_v15  ;;  %v5158_v44 = vld [vmem:[%s7866_s1 + $0x574] sm:$0xf0] }
  0x7c   :  { %1610 = vmatpush.bf16.msrb.mxu0 %v4039_v27  ;;  %v5130_v27 = vld [vmem:[%s7866_s1 + $0x494] sm:$0xf0]  ;;  %v4075_v51 = vor.u32 %v5158_v44, %v4074_v43  ;;  %v3914_v3 = vld [vmem:[%s7866_s1 + $0x428] sm:$0xf]  ;;  %v3484_v43 = vld [vmem:[%s7866_s1 + $0xd8] sm:$0xf0] }
  0x7d   :  { %1624 = vmatpush.bf16.msrb.mxu1 %v4167_v30  ;;  %v3707_v30 = vor.u32 %v5066_v21, %v3706_v20  ;;  %v3963_v32 = vor.u32 %v5130_v27, %v3962_v26  ;;  %v5090_v52 = vld [vmem:[%s7866_s1 + $0x354] sm:$0xf0]  ;;  %v3642_v8 = vld [vmem:[%s7866_s1 + $0x208] sm:$0xf]  ;;  %v5044_v26 = vld [vmem:[%s7866_s1 + $0x1ec] sm:$0xf] }
  0x7e   :  { %1638 = vmatpush.bf16.msrb.mxu2 %v3403_v31  ;;  %v3835_v31 = vor.u32 %v5098_v25, %v3834_v22  ;;  %v5054_v62 = vld [vmem:[%s7866_s1 + $0x234] sm:$0xf0]  ;;  %v3770_v13 = vld [vmem:[%s7866_s1 + $0x308] sm:$0xf]  ;;  %v5012_v22 = vld [vmem:[%s7866_s1 + $0xec] sm:$0xf] }
  0x7f   :  { %1652 = vmatpush.bf16.msrb.mxu3 %v3531_v35  ;;  %v3818_v35 = vld [vmem:[%s7866_s1 + $0x368] sm:$0xf]  ;;  %v5086_v2 = vld [vmem:[%s7866_s1 + $0x334] sm:$0xf0]  ;;  %v3500_v25 = vld [vmem:[%s7866_s1 + $0xf8] sm:$0xf0] }
  0x80   :  { %1611 = vmatpush.bf16.msrb.mxu0 %v4023_v45  ;;  %v3691_v45 = vor.u32 %v5062_v34, %v3690_v33  ;;  %v3819_v46 = vor.u32 %v5094_v38, %v3818_v35  ;;  %v5050_v9 = vld [vmem:[%s7866_s1 + $0x214] sm:$0xf0]  ;;  %v3898_v15 = vld [vmem:[%s7866_s1 + $0x408] sm:$0xf]  ;;  %v3628_v27 = vld [vmem:[%s7866_s1 + $0x1f8] sm:$0xf0]  ;;  %v3503_v34 = vor.u32 %v5012_v22, %v3500_v25 }
  0x81   :  { %1625 = vmatpush.bf16.msrb.mxu1 %v4151_v49  ;;  %v5058_v49 = vld [vmem:[%s7866_s1 + $0x254] sm:$0xf0]  ;;  %v4266_v20 = vld [vmem:[%s7866_s1 + $0x6e8] sm:$0xf]  ;;  %v3631_v35 = vor.u32 %v5044_v26, %v3628_v27  ;;  %v5040_v44 = vld [vmem:[%s7866_s1 + $0x1cc] sm:$0xf] }
  0x82   :  { %1639 = vmatpush.bf16.msrb.mxu2 %v3387_v50  ;;  %v3802_v50 = vld [vmem:[%s7866_s1 + $0x348] sm:$0xf]  ;;  %v3675_v58 = vor.u32 %v5058_v49, %v3674_v48  ;;  %v5082_v14 = vld [vmem:[%s7866_s1 + $0x314] sm:$0xf0]  ;;  %v3487_v49 = vor.u32 %v5008_v39, %v3484_v43  ;;  %v3692_v22 = vld [vmem:[%s7866_s1 + $0x278] sm:$0xf0] }
  0x83   :  { %1653 = vmatpush.bf16.msrb.mxu3 %v3515_v53  ;;  %1612 = vmatmul.bf16.vlgmr.msrb.gmra.mxu0 %v5936_v42  ;;  %v3930_v53 = vld [vmem:[%s7866_s1 + $0x448] sm:$0xf]  ;;  %v3803_v59 = vor.u32 %v5090_v52, %v3802_v50  ;;  %v5206_v21 = vld [vmem:[%s7866_s1 + $0x6f4] sm:$0xf0]  ;;  %v3771_v28 = vor.u32 %v5082_v14, %v3770_v13 }
  0x84   :  { %1660 = vmatpush.bf16.msra.mxu0 %v3755_v54  ;;  %1626 = vmatmul.bf16.vlgmr.msrb.gmra.mxu1 %v5934_v41  ;;  %v5122_v54 = vld [vmem:[%s7866_s1 + $0x454] sm:$0xf0]  ;;  %v4267_v33 = vor.u32 %v5206_v21, %v4266_v20  ;;  %v4202_v14 = vld [vmem:[%s7866_s1 + $0x668] sm:$0xf]  ;;  %v3564_v20 = vld [vmem:[%s7866_s1 + $0x178] sm:$0xf0] }
  0x85   :  { %1674 = vmatpush.bf16.msra.mxu1 %v3883_v55  ;;  %1640 = vmatmul.bf16.vlgmr.msrb.gmra.mxu2 %v5704_v57  ;;  %v4058_v55 = vld [vmem:[%s7866_s1 + $0x548] sm:$0xf]  ;;  %v3931_v60 = vor.u32 %v5122_v54, %v3930_v53  ;;  %v5202_v38 = vld [vmem:[%s7866_s1 + $0x6d4] sm:$0xf0]  ;;  %v5004_v53 = vld [vmem:[%s7866_s1 + $0xac] sm:$0xf] }
  0x86   :  { %1688 = vmatpush.bf16.msra.mxu2 %v4011_v56  ;;  %1654 = vmatmul.bf16.vlgmr.msrb.gmra.mxu3 %v5746_v11  ;;  %v5154_v56 = vld [vmem:[%s7866_s1 + $0x554] sm:$0xf0]  ;;  %v5060_v21 = vld [vmem:[%s7866_s1 + $0x26c] sm:$0xf]  ;;  %v4186_v27 = vld [vmem:[%s7866_s1 + $0x648] sm:$0xf] }
  0x87   :  { %1702 = vmatpush.bf16.msra.mxu3 %v4139_v61  ;;  %v3658_v61 = vld [vmem:[%s7866_s1 + $0x228] sm:$0xf]  ;;  %v4059_v1 = vor.u32 %v5154_v56, %v4058_v55  ;;  %v5198_v52 = vld [vmem:[%s7866_s1 + $0x6b4] sm:$0xf0]  ;;  %v3468_v55 = vld [vmem:[%s7866_s1 + $0xb8] sm:$0xf0] }
  0x88   :  { %1661 = vmatpush.bf16.msra.mxu0 %v3739_v4  ;;  %v5118_v4 = vld [vmem:[%s7866_s1 + $0x434] sm:$0xf0]  ;;  %v3659_v7 = vor.u32 %v5054_v62, %v3658_v61  ;;  %v5036_v56 = vld [vmem:[%s7866_s1 + $0x1ac] sm:$0xf]  ;;  %v3471_v62 = vor.u32 %v5004_v53, %v3468_v55 }
  0x89   :  { %1675 = vmatpush.bf16.msra.mxu1 %v3867_v5  ;;  %v4042_v5 = vld [vmem:[%s7866_s1 + $0x528] sm:$0xf]  ;;  %v3915_v12 = vor.u32 %v5118_v4, %v3914_v3  ;;  %v5000_v3 = vld [vmem:[%s7866_s1 + $0x8c] sm:$0xf]  ;;  %v5182_v43 = vld [vmem:[%s7866_s1 + $0x634] sm:$0xf0] }
  0x8a   :  { %1689 = vmatpush.bf16.msra.mxu2 %v3995_v6  ;;  %v5150_v6 = vld [vmem:[%s7866_s1 + $0x534] sm:$0xf0] }
  0x8b   :  { %1703 = vmatpush.bf16.msra.mxu3 %v4123_v10  ;;  %v3787_v10 = vor.u32 %v5086_v2, %v3786_v63  ;;  %v4043_v16 = vor.u32 %v5150_v6, %v4042_v5  ;;  %v5194_v2 = vld [vmem:[%s7866_s1 + $0x694] sm:$0xf0]  ;;  %v3452_v5 = vld [vmem:[%s7866_s1 + $0x98] sm:$0xf0]  ;;  %v5032_v6 = vld [vmem:[%s7866_s1 + $0x18c] sm:$0xf] }
  0x8c   :  { %1662 = vmatpush.bf16.msra.mxu0 %v3723_v17  ;;  %v5114_v17 = vld [vmem:[%s7866_s1 + $0x414] sm:$0xf0] }
  0x8d   :  { %1676 = vmatpush.bf16.msra.mxu1 %v3851_v18  ;;  %v4026_v18 = vld [vmem:[%s7866_s1 + $0x508] sm:$0xf]  ;;  %v3899_v29 = vor.u32 %v5114_v17, %v3898_v15  ;;  %v5190_v15 = vld [vmem:[%s7866_s1 + $0x674] sm:$0xf0] }
  0x8e   :  { %1690 = vmatpush.bf16.msra.mxu2 %v3979_v19  ;;  %v5146_v19 = vld [vmem:[%s7866_s1 + $0x514] sm:$0xf0] }
  0x8f   :  { %1704 = vmatpush.bf16.msra.mxu3 %v4107_v24  ;;  %v3643_v24 = vor.u32 %v5050_v9, %v3642_v8  ;;  %v5064_v8 = vld [vmem:[%s7866_s1 + $0x28c] sm:$0xf]  ;;  %v3708_v9 = vld [vmem:[%s7866_s1 + $0x298] sm:$0xf0]  ;;  %v5178_v53 = vld [vmem:[%s7866_s1 + $0x614] sm:$0xf0] }
  0x90   :  { %1663 = vmatpush.bf16.msra.mxu0 %v3707_v30  ;;  %v5076_v30 = vld [vmem:[%s7866_s1 + $0x2ec] sm:$0xf]  ;;  %v3711_v17 = vor.u32 %v5064_v8, %v3708_v9 }
  0x91   :  { %1677 = vmatpush.bf16.msra.mxu1 %v3835_v31  ;;  %v3756_v31 = vld [vmem:[%s7866_s1 + $0x2f8] sm:$0xf0] }
  0x92   :  { %1691 = vmatpush.bf16.msra.mxu2 %v3963_v32  ;;  %v4027_v32 = vor.u32 %v5146_v19, %v4026_v18  ;;  %v3759_v40 = vor.u32 %v5076_v30, %v3756_v31  ;;  %v3436_v18 = vld [vmem:[%s7866_s1 + $0x78] sm:$0xf0]  ;;  %v5028_v19 = vld [vmem:[%s7866_s1 + $0x16c] sm:$0xf]  ;;  %v3695_v30 = vor.u32 %v5060_v21, %v3692_v22 }
  0x93   :  { %1705 = vmatpush.bf16.msra.mxu3 %v4091_v36  ;;  %v4250_v36 = vld [vmem:[%s7866_s1 + $0x6c8] sm:$0xf]  ;;  %v3567_v26 = vor.u32 %v5028_v19, %v3564_v20  ;;  %v3420_v31 = vld [vmem:[%s7866_s1 + $0x58] sm:$0xf0]  ;;  %v5136_v19 = vld [vmem:[%s7866_s1 + $0x4cc] sm:$0xf] }
  0x94   :  { %1664 = vmatpush.bf16.msra.mxu0 %v3691_v45  ;;  %v3612_v45 = vld [vmem:[%s7866_s1 + $0x1d8] sm:$0xf0]  ;;  %v4251_v48 = vor.u32 %v5202_v38, %v4250_v36  ;;  %v5168_v22 = vld [vmem:[%s7866_s1 + $0x5cc] sm:$0xf] }
  0x95   :  { %1678 = vmatpush.bf16.msra.mxu1 %v3819_v46  ;;  %v5072_v46 = vld [vmem:[%s7866_s1 + $0x2cc] sm:$0xf]  ;;  %v3615_v50 = vor.u32 %v5040_v44, %v3612_v45  ;;  %v3996_v21 = vld [vmem:[%s7866_s1 + $0x4d8] sm:$0xf0] }
  0x96   :  { %1692 = vmatpush.bf16.msra.mxu2 %v3947_v47  ;;  %v3740_v47 = vld [vmem:[%s7866_s1 + $0x2d8] sm:$0xf0]  ;;  %v4988_v44 = vld [vmem:[%s7866_s1 + $0x2c] sm:$0xf] }
  0x97   :  { %1706 = vmatpush.bf16.msra.mxu3 %v4075_v51  ;;  %v4234_v51 = vld [vmem:[%s7866_s1 + $0x6a8] sm:$0xf]  ;;  %v3743_v54 = vor.u32 %v5072_v46, %v3740_v47  ;;  %v3404_v46 = vld [vmem:[%s7866_s1 + $0x38] sm:$0xf0]  ;;  %v5020_v47 = vld [vmem:[%s7866_s1 + $0x12c] sm:$0xf] }
  0x98   :  { %1665 = vmatpush.bf16.msra.mxu0 %v3675_v58  ;;  %v3596_v58 = vld [vmem:[%s7866_s1 + $0x1b8] sm:$0xf0]  ;;  %v4235_v61 = vor.u32 %v5198_v52, %v4234_v51  ;;  %v4154_v52 = vld [vmem:[%s7866_s1 + $0x608] sm:$0xf] }
  0x99   :  { %1679 = vmatpush.bf16.msra.mxu1 %v3803_v59  ;;  %v5068_v59 = vld [vmem:[%s7866_s1 + $0x2ac] sm:$0xf]  ;;  %v3599_v63 = vor.u32 %v5036_v56, %v3596_v58  ;;  %v3388_v58 = vld [vmem:[%s7866_s1 + $0x18] sm:$0xf0] }
  0x9a   :  { %1693 = vmatpush.bf16.msra.mxu2 %v3931_v60  ;;  %v3724_v60 = vld [vmem:[%s7866_s1 + $0x2b8] sm:$0xf0]  ;;  %v4984_v56 = vld [vmem:[%s7866_s1 + $0xc] sm:$0xf] }
  0x9b   :  { %1707 = vmatpush.bf16.msra.mxu3 %v4059_v1  ;;  %v4218_v1 = vld [vmem:[%s7866_s1 + $0x688] sm:$0xf]  ;;  %v3727_v4 = vor.u32 %v5068_v59, %v3724_v60  ;;  %v5016_v59 = vld [vmem:[%s7866_s1 + $0x10c] sm:$0xf]  ;;  %v3391_v8 = vor.u32 %v4984_v56, %v3388_v58 }
  0x9c   :  { %1666 = vmatpush.bf16.msra.mxu0 %v3659_v7  ;;  %v3580_v7 = vld [vmem:[%s7866_s1 + $0x198] sm:$0xf0]  ;;  %v5124_v56 = vld [vmem:[%s7866_s1 + $0x46c] sm:$0xf] }
  0x9d   :  { %1680 = vmatpush.bf16.msra.mxu1 %v3787_v10  ;;  %v4219_v10 = vor.u32 %v5194_v2, %v4218_v1  ;;  %v3583_v13 = vor.u32 %v5032_v6, %v3580_v7  ;;  %v5108_v1 = vld [vmem:[%s7866_s1 + $0x3ec] sm:$0xf]  ;;  %v3884_v2 = vld [vmem:[%s7866_s1 + $0x3f8] sm:$0xf0] }
  0x9e   :  { %1694 = vmatpush.bf16.msra.mxu2 %v3915_v12  ;;  %v3455_v12 = vor.u32 %v5000_v3, %v3452_v5  ;;  %v5140_v3 = vld [vmem:[%s7866_s1 + $0x4ec] sm:$0xf]  ;;  %v4012_v5 = vld [vmem:[%s7866_s1 + $0x4f8] sm:$0xf0] }
  0x9f   :  { %1708 = vmatpush.bf16.msra.mxu3 %v4043_v16  ;;  %v4996_v16 = vld [vmem:[%s7866_s1 + $0x6c] sm:$0xf]  ;;  %v4140_v7 = vld [vmem:[%s7866_s1 + $0x5f8] sm:$0xf0] }
  0xa0   :  { %1667 = vmatpush.bf16.msra.mxu0 %v3643_v24  ;;  %v4203_v24 = vor.u32 %v5190_v15, %v4202_v14  ;;  %v3439_v25 = vor.u32 %v4996_v16, %v3436_v18  ;;  %v5172_v6 = vld [vmem:[%s7866_s1 + $0x5ec] sm:$0xf]  ;;  %v3887_v14 = vor.u32 %v5108_v1, %v3884_v2  ;;  %v4015_v15 = vor.u32 %v5140_v3, %v4012_v5  ;;  %v3868_v18 = vld [vmem:[%s7866_s1 + $0x3d8] sm:$0xf0] }
  0xa1   :  { %1681 = vmatpush.bf16.msra.mxu1 %v3771_v28  ;;  %v5186_v28 = vld [vmem:[%s7866_s1 + $0x654] sm:$0xf0]  ;;  %v4143_v16 = vor.u32 %v5172_v6, %v4140_v7  ;;  %v4204_v1 = vld [vmem:[%s7866_s1 + $0x678] sm:$0xf0]  ;;  %v5088_v6 = vld [vmem:[%s7866_s1 + $0x34c] sm:$0xf] }
  0xa2   :  { %1695 = vmatpush.bf16.msra.mxu2 %v3899_v29  ;;  %v4992_v29 = vld [vmem:[%s7866_s1 + $0x4c] sm:$0xf]  ;;  %v4187_v36 = vor.u32 %v5186_v28, %v4186_v27  ;;  %v3999_v28 = vor.u32 %v5136_v19, %v3996_v21  ;;  %v3804_v7 = vld [vmem:[%s7866_s1 + $0x358] sm:$0xf0] }
  0xa3   :  { %1709 = vmatpush.bf16.msra.mxu3 %v4027_v32  ;;  %1668 = vmatmul.bf16.vlgmr.msra.gmra.mxu0 %v5718_v0  ;;  %v5024_v32 = vld [vmem:[%s7866_s1 + $0x14c] sm:$0xf]  ;;  %v3423_v38 = vor.u32 %v4992_v29, %v3420_v31  ;;  %v3852_v31 = vld [vmem:[%s7866_s1 + $0x3b8] sm:$0xf0] }
  0xa4   :  { %1716 = vmatpush.bf16.msrb.mxu0 %v4267_v33  ;;  %1682 = vmatmul.bf16.vlgmr.msra.gmra.mxu1 %v5773_v23  ;;  %v3548_v33 = vld [vmem:[%s7866_s1 + $0x158] sm:$0xf0]  ;;  %v5084_v19 = vld [vmem:[%s7866_s1 + $0x32c] sm:$0xf] }
  0xa5   :  { %1730 = vmatpush.bf16.msrb.mxu1 %v3503_v34  ;;  %1696 = vmatmul.bf16.vlgmr.msra.gmra.mxu2 %v5923_v37  ;;  %v5056_v34 = vld [vmem:[%s7866_s1 + $0x24c] sm:$0xf]  ;;  %v3551_v39 = vor.u32 %v5024_v32, %v3548_v33 }
  0xa6   :  { %1744 = vmatpush.bf16.msrb.mxu2 %v3631_v35  ;;  %1710 = vmatmul.bf16.vlgmr.msra.gmra.mxu3 %v5936_v42  ;;  %v3676_v35 = vld [vmem:[%s7866_s1 + $0x258] sm:$0xf0]  ;;  %v5132_v32 = vld [vmem:[%s7866_s1 + $0x4ac] sm:$0xf] }
  0xa7   :  { %1758 = vmatpush.bf16.msrb.mxu3 %v3759_v40  ;;  %v4170_v40 = vld [vmem:[%s7866_s1 + $0x628] sm:$0xf]  ;;  %v3679_v45 = vor.u32 %v5056_v34, %v3676_v35  ;;  %v3980_v34 = vld [vmem:[%s7866_s1 + $0x4b8] sm:$0xf0]  ;;  %v5164_v35 = vld [vmem:[%s7866_s1 + $0x5ac] sm:$0xf] }
  0xa8   :  { %1717 = vmatpush.bf16.msrb.mxu0 %v4251_v48  ;;  %v3532_v48 = vld [vmem:[%s7866_s1 + $0x138] sm:$0xf0]  ;;  %v4171_v51 = vor.u32 %v5182_v43, %v4170_v40  ;;  %v3983_v43 = vor.u32 %v5132_v32, %v3980_v34  ;;  %v5116_v21 = vld [vmem:[%s7866_s1 + $0x42c] sm:$0xf] }
  0xa9   :  { %1731 = vmatpush.bf16.msrb.mxu1 %v3487_v49  ;;  %v5052_v49 = vld [vmem:[%s7866_s1 + $0x22c] sm:$0xf]  ;;  %v3535_v55 = vor.u32 %v5020_v47, %v3532_v48  ;;  %v4092_v48 = vld [vmem:[%s7866_s1 + $0x598] sm:$0xf0] }
  0xaa   :  { %1745 = vmatpush.bf16.msrb.mxu2 %v3615_v50  ;;  %v3660_v50 = vld [vmem:[%s7866_s1 + $0x238] sm:$0xf0]  ;;  %v5160_v47 = vld [vmem:[%s7866_s1 + $0x58c] sm:$0xf] }
  0xab   :  { %1759 = vmatpush.bf16.msrb.mxu3 %v3743_v54  ;;  %v3407_v54 = vor.u32 %v4988_v44, %v3404_v46  ;;  %v3663_v60 = vor.u32 %v5052_v49, %v3660_v50  ;;  %v5192_v49 = vld [vmem:[%s7866_s1 + $0x68c] sm:$0xf]  ;;  %v4220_v50 = vld [vmem:[%s7866_s1 + $0x698] sm:$0xf0]  ;;  %v6806_v2 = vpop.f32.mrf.mxu1 }
  0xac   :  { %1718 = vmatpush.bf16.msrb.mxu0 %v4235_v61  ;;  %v3516_v61 = vld [vmem:[%s7866_s1 + $0x118] sm:$0xf0]  ;;  %v4223_v58 = vor.u32 %v5192_v49, %v4220_v50  ;;  %v5080_v32 = vld [vmem:[%s7866_s1 + $0x30c] sm:$0xf]  ;;  %v4514_v49 = vld [vmem:[%s7869_s3 + $0x1e0] sm:$0xf] }
  0xad   :  { %1732 = vmatpush.bf16.msrb.mxu1 %v3471_v62  ;;  %v5048_v62 = vld [vmem:[%s7866_s1 + $0x20c] sm:$0xf]  ;;  %v3519_v9 = vor.u32 %v5016_v59, %v3516_v61  ;;  %v3948_v59 = vld [vmem:[%s7866_s1 + $0x478] sm:$0xf0]  ;;  %v5269_v50 = vld [vmem:[%s7869_s3 + $0x1ec] sm:$0xf0] }
  0xae   :  { %1746 = vmatpush.bf16.msrb.mxu2 %v3599_v63  ;;  %v3644_v63 = vld [vmem:[%s7866_s1 + $0x218] sm:$0xf0] }
  0xaf   :  { %1760 = vmatpush.bf16.msrb.mxu3 %v3727_v4  ;;  %v4155_v4 = vor.u32 %v5178_v53, %v4154_v52  ;;  %v4095_v53 = vor.u32 %v5160_v47, %v4092_v48  ;;  %v4076_v61 = vld [vmem:[%s7866_s1 + $0x578] sm:$0xf0]  ;;  %v5237_v47 = vld [vmem:[%s7869_s3 + $0xec] sm:$0xf0] }
  0xb0   :  { %1719 = vmatpush.bf16.msrb.mxu0 %v4219_v10  ;;  %v5204_v10 = vld [vmem:[%s7866_s1 + $0x6ec] sm:$0xf] }
  0xb1   :  { %1733 = vmatpush.bf16.msrb.mxu1 %v3455_v12  ;;  %v4268_v12 = vld [vmem:[%s7866_s1 + $0x6f8] sm:$0xf0] }
  0xb2   :  { %1747 = vmatpush.bf16.msrb.mxu2 %v3583_v13  ;;  %v3647_v13 = vor.u32 %v5048_v62, %v3644_v63  ;;  %v4271_v20 = vor.u32 %v5204_v10, %v4268_v12  ;;  %v6798_v62 = vpop.f32.mrf.mxu0  ;;  %v5188_v63 = vld [vmem:[%s7866_s1 + $0x66c] sm:$0xf]  ;;  %v3932_v10 = vld [vmem:[%s7866_s1 + $0x458] sm:$0xf0] }
  0xb3   :  { %1761 = vmatpush.bf16.msrb.mxu3 %v3711_v17  ;;  %v5104_v17 = vld [vmem:[%s7866_s1 + $0x3cc] sm:$0xf] }
  0xb4   :  { %1720 = vmatpush.bf16.msrb.mxu0 %v4203_v24  ;;  %v4124_v24 = vld [vmem:[%s7866_s1 + $0x5d8] sm:$0xf0]  ;;  %v3871_v27 = vor.u32 %v5104_v17, %v3868_v18  ;;  %v5152_v12 = vld [vmem:[%s7866_s1 + $0x54c] sm:$0xf] }
  0xb5   :  { %1734 = vmatpush.bf16.msrb.mxu1 %v3439_v25  ;;  %v5200_v25 = vld [vmem:[%s7866_s1 + $0x6cc] sm:$0xf]  ;;  %v4127_v29 = vor.u32 %v5168_v22, %v4124_v24  ;;  %v6841_v22 = vpop.f32.mrf.mxu2 }
  0xb6   :  { %1748 = vmatpush.bf16.msrb.mxu2 %v3567_v26  ;;  %v4252_v26 = vld [vmem:[%s7866_s1 + $0x6d8] sm:$0xf0] }
  0xb7   :  { %1762 = vmatpush.bf16.msrb.mxu3 %v3695_v30  ;;  %v5100_v30 = vld [vmem:[%s7866_s1 + $0x3ac] sm:$0xf]  ;;  %v4255_v33 = vor.u32 %v5200_v25, %v4252_v26  ;;  %v3916_v25 = vld [vmem:[%s7866_s1 + $0x438] sm:$0xf0] }
  0xb8   :  { %1721 = vmatpush.bf16.msrb.mxu0 %v4187_v36  ;;  %v4108_v36 = vld [vmem:[%s7866_s1 + $0x5b8] sm:$0xf0]  ;;  %v3855_v40 = vor.u32 %v5100_v30, %v3852_v31  ;;  %v5148_v26 = vld [vmem:[%s7866_s1 + $0x52c] sm:$0xf]  ;;  %v6861_v30 = vld [vmem:[%s7868_s2] sm:$0xf]  ;;  %v3919_v34 = vor.u32 %v5116_v21, %v3916_v25 }
  0xb9   :  { %1735 = vmatpush.bf16.msrb.mxu1 %v3423_v38  ;;  %v5196_v38 = vld [vmem:[%s7866_s1 + $0x6ac] sm:$0xf]  ;;  %v4111_v44 = vor.u32 %v5164_v35, %v4108_v36  ;;  %v3772_v36 = vld [vmem:[%s7866_s1 + $0x318] sm:$0xf0]  ;;  %v4322_v21 = vld [vmem:[%s7869_s3 + $0x60] sm:$0xf] }
  0xba   :  { %1749 = vmatpush.bf16.msrb.mxu2 %v3551_v39  ;;  %v4236_v39 = vld [vmem:[%s7866_s1 + $0x6b8] sm:$0xf0]  ;;  %v3775_v48 = vor.u32 %v5080_v32, %v3772_v36  ;;  %v4450_v25 = vld [vmem:[%s7869_s3 + $0x160] sm:$0xf] }
  0xbb   :  { %1763 = vmatpush.bf16.msrb.mxu3 %v3679_v45  ;;  %v3836_v45 = vld [vmem:[%s7866_s1 + $0x398] sm:$0xf0]  ;;  %v4239_v46 = vor.u32 %v5196_v38, %v4236_v39  ;;  %v5112_v38 = vld [vmem:[%s7866_s1 + $0x40c] sm:$0xf]  ;;  %v4434_v36 = vld [vmem:[%s7869_s3 + $0x140] sm:$0xf] }
  0xbc   :  { %1722 = vmatpush.bf16.msrb.mxu0 %v4171_v51  ;;  %v3900_v39 = vld [vmem:[%s7866_s1 + $0x418] sm:$0xf0] }
  0xbd   :  { %1736 = vmatpush.bf16.msrb.mxu1 %v3407_v54  ;;  %v5092_v54 = vld [vmem:[%s7866_s1 + $0x36c] sm:$0xf] }
  0xbe   :  { %1750 = vmatpush.bf16.msrb.mxu2 %v3535_v55  ;;  %v3820_v55 = vld [vmem:[%s7866_s1 + $0x378] sm:$0xf0] }
  0xbf   :  { %1764 = vmatpush.bf16.msrb.mxu3 %v3663_v60  ;;  %v5156_v60 = vld [vmem:[%s7866_s1 + $0x56c] sm:$0xf]  ;;  %v3823_v3 = vor.u32 %v5092_v54, %v3820_v55 }
  0xc0   :  { %1723 = vmatpush.bf16.msrb.mxu0 %v4155_v4  ;;  %v3951_v4 = vor.u32 %v5124_v56, %v3948_v59  ;;  %v4079_v5 = vor.u32 %v5156_v60, %v4076_v61  ;;  %v4515_v56 = vor.u32 %v5269_v50, %v4514_v49  ;;  %v5233_v59 = vld [vmem:[%s7869_s3 + $0xcc] sm:$0xf0]  ;;  %v1475_v60 = vpop.f32.mrf.mxu2  ;;  %v4498_v61 = vld [vmem:[%s7869_s3 + $0x1c0] sm:$0xf]  ;;  %v273_v50 = vperm.slane %v6861_v30, 1 }
  0xc1   :  { %1737 = vmatpush.bf16.msrb.mxu1 %v3391_v8  ;;  %v5120_v8 = vld [vmem:[%s7866_s1 + $0x44c] sm:$0xf] }
  0xc2   :  { %1751 = vmatpush.bf16.msrb.mxu2 %v3519_v9  ;;  %v4207_v9 = vor.u32 %v5188_v63, %v4204_v1  ;;  %v3935_v17 = vor.u32 %v5120_v8, %v3932_v10  ;;  %v5265_v63 = vld [vmem:[%s7869_s3 + $0x1cc] sm:$0xf0] }
  0xc3   :  { %1765 = vmatpush.bf16.msrb.mxu3 %v3647_v13  ;;  %1724 = vmatmul.bf16.vlgmr.msrb.gmra.mxu0 %v5934_v41  ;;  %v4060_v13 = vld [vmem:[%s7866_s1 + $0x558] sm:$0xf0]  ;;  %v5229_v8 = vld [vmem:[%s7869_s3 + $0xac] sm:$0xf0] }
  0xc4   :  { %1772 = vmatpush.bf16.msra.mxu0 %v3887_v14  ;;  %1738 = vmatmul.bf16.vlgmr.msrb.gmra.mxu1 %v5704_v57  ;;  %v3964_v57 = vld [vmem:[%s7866_s1 + $0x498] sm:$0xf0]  ;;  %v5184_v14 = vld [vmem:[%s7866_s1 + $0x64c] sm:$0xf]  ;;  %v4063_v18 = vor.u32 %v5152_v12, %v4060_v13 }
  0xc5   :  { %1786 = vmatpush.bf16.msra.mxu1 %v4015_v15  ;;  %1752 = vmatmul.bf16.vlgmr.msrb.gmra.mxu2 %v5746_v11  ;;  %v5096_v11 = vld [vmem:[%s7866_s1 + $0x38c] sm:$0xf]  ;;  %v4188_v15 = vld [vmem:[%s7866_s1 + $0x658] sm:$0xf0] }
  0xc6   :  { %1800 = vmatpush.bf16.msra.mxu2 %v4143_v16  ;;  %1766 = vmatmul.bf16.vlgmr.msrb.gmra.mxu3 %v5718_v0  ;;  %v5128_v0 = vld [vmem:[%s7866_s1 + $0x48c] sm:$0xf]  ;;  %v3839_v51 = vor.u32 %v5096_v11, %v3836_v45  ;;  %v3807_v16 = vor.u32 %v5088_v6, %v3804_v7  ;;  %v4191_v24 = vor.u32 %v5184_v14, %v4188_v15  ;;  %v4028_v11 = vld [vmem:[%s7866_s1 + $0x518] sm:$0xf0]  ;;  %v4354_v7 = vld [vmem:[%s7869_s3 + $0xa0] sm:$0xf] }
  0xc7   :  { %1814 = vmatpush.bf16.msra.mxu3 %v4271_v20  ;;  %v3967_v52 = vor.u32 %v5128_v0, %v3964_v57  ;;  %v3788_v20 = vld [vmem:[%s7866_s1 + $0x338] sm:$0xf0]  ;;  %v5176_v45 = vld [vmem:[%s7866_s1 + $0x60c] sm:$0xf]  ;;  %v6884_v0 = vpop.f32.mrf.mxu3  ;;  %v4386_v57 = vld [vmem:[%s7869_s3 + $0xe0] sm:$0xf]  ;;  %v4499_v6 = vor.u32 %v5265_v63, %v4498_v61  ;;  %v4355_v14 = vor.u32 %v5229_v8, %v4354_v7 }
  0xc8   :  { %1773 = vmatpush.bf16.msra.mxu0 %v3871_v27  ;;  %v4044_v27 = vld [vmem:[%s7866_s1 + $0x538] sm:$0xf0]  ;;  %v3791_v31 = vor.u32 %v5084_v19, %v3788_v20  ;;  %v4387_v55 = vor.u32 %v5237_v47, %v4386_v57  ;;  %v5225_v15 = vld [vmem:[%s7869_s3 + $0x8c] sm:$0xf0]  ;;  %v4516_v7 = vld [vmem:[%s7869_s3 + $0x1f0] sm:$0xf0] }
  0xc9   :  { %1787 = vmatpush.bf16.msra.mxu1 %v3999_v28  ;;  %v5180_v28 = vld [vmem:[%s7866_s1 + $0x62c] sm:$0xf]  ;;  %v4047_v35 = vor.u32 %v5148_v26, %v4044_v27  ;;  %v5245_v57 = vld [vmem:[%s7869_s3 + $0x12c] sm:$0xf0] }
  0xca   :  { %1801 = vmatpush.bf16.msra.mxu2 %v4127_v29  ;;  %v4172_v29 = vld [vmem:[%s7866_s1 + $0x638] sm:$0xf0]  ;;  %v5301_v61 = vld [vmem:[%s7869_s3 + $0x2ec] sm:$0xf0] }
  0xcb   :  { %1815 = vmatpush.bf16.msra.mxu3 %v4255_v33  ;;  %v1447_v33 = vpop.f32.mrf.mxu0  ;;  %v5241_v63 = vld [vmem:[%s7869_s3 + $0x10c] sm:$0xf0] }
  0xcc   :  { %1774 = vmatpush.bf16.msra.mxu0 %v3855_v40  ;;  %v1461_v40 = vpop.f32.mrf.mxu1 }
  0xcd   :  { %1788 = vmatpush.bf16.msra.mxu1 %v3983_v43  ;;  %v4175_v43 = vor.u32 %v5180_v28, %v4172_v29 }
  0xce   :  { %1802 = vmatpush.bf16.msra.mxu2 %v4111_v44  ;;  %v5144_v44 = vld [vmem:[%s7866_s1 + $0x50c] sm:$0xf] }
  0xcf   :  { %1816 = vmatpush.bf16.msra.mxu3 %v4239_v46  ;;  %v4156_v46 = vld [vmem:[%s7866_s1 + $0x618] sm:$0xf0]  ;;  %v1489_v13 = vpop.f32.mrf.mxu3 }
  0xd0   :  { %1775 = vmatpush.bf16.msra.mxu0 %v3839_v51  ;;  %v272_v51 = vperm.slane %v6861_v30, 0  ;;  %v4159_v54 = vor.u32 %v5176_v45, %v4156_v46  ;;  %v5213_v45 = vld [vmem:[%s7869_s3 + $0x2c] sm:$0xf0]  ;;  %v4418_v46 = vld [vmem:[%s7869_s3 + $0x120] sm:$0xf] }
  0xd1   :  { %1789 = vmatpush.bf16.msra.mxu1 %v3967_v52  ;;  %v3903_v52 = vor.u32 %v5112_v38, %v3900_v39  ;;  %v5249_v38 = vld [vmem:[%s7869_s3 + $0x14c] sm:$0xf0] }
  0xd2   :  { %1803 = vmatpush.bf16.msra.mxu2 %v4095_v53  ;;  %v4031_v53 = vor.u32 %v5144_v44, %v4028_v11  ;;  %v1446_v1 = vadd.f32 %v6798_v62, %v272_v51  ;;  %v4435_v44 = vor.u32 %v5249_v38, %v4434_v36  ;;  %v4290_v11 = vld [vmem:[%s7869_s3 + $0x20] sm:$0xf] }
  0xd3   :  { %1817 = vmatpush.bf16.msra.mxu3 %v4223_v58  ;;  %v4370_v58 = vld [vmem:[%s7869_s3 + $0xc0] sm:$0xf] }
  0xd4   :  { %1776 = vmatpush.bf16.msra.mxu0 %v3823_v3  ;;  %v1448_v3 = vadd.f32 %v1447_v33, %v272_v51  ;;  %v1515_v62 = vpop.f32.mrf.mxu1  ;;  %v1460_v10 = vadd.f32 %v6806_v2, %v1446_v1  ;;  %v4466_v2 = vld [vmem:[%s7869_s3 + $0x180] sm:$0xf]  ;;  %v5235_v1 = vld [vmem:[%s7869_s3 + $0xe4] sm:$0xf] }
  0xd5   :  { %1790 = vmatpush.bf16.msra.mxu1 %v3951_v4  ;;  %v4371_v4 = vor.u32 %v5233_v59, %v4370_v58  ;;  %v4419_v58 = vor.u32 %v5245_v57, %v4418_v46  ;;  %v4402_v59 = vld [vmem:[%s7869_s3 + $0x100] sm:$0xf]  ;;  %v4468_v46 = vld [vmem:[%s7869_s3 + $0x190] sm:$0xf0] }
  0xd6   :  { %1804 = vmatpush.bf16.msra.mxu2 %v4079_v5  ;;  %v1501_v5 = vpop.f32.mrf.mxu0  ;;  %v1462_v12 = vadd.f32 %v1461_v40, %v1448_v3  ;;  %v4388_v3 = vld [vmem:[%s7869_s3 + $0xf0] sm:$0xf0]  ;;  %v4594_v38 = vld [vmem:[%s7869_s3 + $0x280] sm:$0xf] }
  0xd7   :  { %1818 = vmatpush.bf16.msra.mxu3 %v4207_v9  ;;  %v4482_v9 = vld [vmem:[%s7869_s3 + $0x1a0] sm:$0xf]  ;;  %v1543_v29 = vpop.f32.mrf.mxu3 }
  0xd8   :  { %1777 = vmatpush.bf16.msra.mxu0 %v3807_v16  ;;  %v1474_v16 = vadd.f32 %v6841_v22, %v1460_v10  ;;  %v5253_v22 = vld [vmem:[%s7869_s3 + $0x16c] sm:$0xf0]  ;;  %v1544_v8 = vadd.f32 %v1543_v29, %v273_v50  ;;  %v4391_v10 = vor.u32 %v5235_v1, %v4388_v3  ;;  %v4356_v29 = vld [vmem:[%s7869_s3 + $0xb0] sm:$0xf0] }
  0xd9   :  { %1791 = vmatpush.bf16.msra.mxu1 %v3935_v17  ;;  %v1476_v17 = vadd.f32 %v1475_v60, %v1462_v12  ;;  %v4451_v33 = vor.u32 %v5253_v22, %v4450_v25  ;;  %v4642_v60 = vld [vmem:[%s7869_s3 + $0x2e0] sm:$0xf]  ;;  %v5293_v25 = vld [vmem:[%s7869_s3 + $0x2ac] sm:$0xf0] }
  0xda   :  { %1805 = vmatpush.bf16.msra.mxu2 %v4063_v18  ;;  %v1529_v18 = vpop.f32.mrf.mxu2  ;;  %v1488_v26 = vadd.f32 %v6884_v0, %v1474_v16  ;;  %v4626_v12 = vld [vmem:[%s7869_s3 + $0x2c0] sm:$0xf]  ;;  %v4500_v16 = vld [vmem:[%s7869_s3 + $0x1d0] sm:$0xf0] }
  0xdb   :  { %1819 = vmatpush.bf16.msra.mxu3 %v4191_v24  ;;  %v5221_v24 = vld [vmem:[%s7869_s3 + $0x6c] sm:$0xf0]  ;;  %v1490_v27 = vadd.f32 %v1489_v13, %v1476_v17 }
  0xdc   :  { %1778 = vmatpush.bf16.msra.mxu0 %v3791_v31  ;;  %v1517_v31 = vpop.f32.mrf.mxu1  ;;  %v4323_v32 = vor.u32 %v5221_v24, %v4322_v21  ;;  %v1502_v39 = vadd.f32 %v1501_v5, %v1488_v26  ;;  %v4610_v24 = vld [vmem:[%s7869_s3 + $0x2a0] sm:$0xf] }
  0xdd   :  { %1792 = vmatpush.bf16.msra.mxu1 %v3919_v34  ;;  %v4306_v34 = vld [vmem:[%s7869_s3 + $0x40] sm:$0xf] }
  0xde   :  { %1806 = vmatpush.bf16.msra.mxu2 %v4047_v35  ;;  %v1503_v28 = vpop.f32.mrf.mxu0  ;;  %v5217_v35 = vld [vmem:[%s7869_s3 + $0x4c] sm:$0xf0]  ;;  %v1516_v47 = vadd.f32 %v1515_v62, %v1502_v39 }
  0xdf   :  { %1820 = vmatpush.bf16.msra.mxu3 %v4175_v43  ;;  %v1504_v40 = vadd.f32 %v1503_v28, %v1490_v27  ;;  %v4307_v43 = vor.u32 %v5217_v35, %v4306_v34  ;;  %v5227_v28 = vld [vmem:[%s7869_s3 + $0xa4] sm:$0xf]  ;;  %v4484_v34 = vld [vmem:[%s7869_s3 + $0x1b0] sm:$0xf0]  ;;  %v5289_v39 = vld [vmem:[%s7869_s3 + $0x28c] sm:$0xf0] }
  0xe0   :  { %1779 = vmatpush.bf16.msra.mxu0 %v3775_v48  ;;  %v1530_v5 = vadd.f32 %v1529_v18, %v1516_v47  ;;  %v4359_v36 = vor.u32 %v5227_v28, %v4356_v29  ;;  %v5239_v28 = vld [vmem:[%s7869_s3 + $0x104] sm:$0xf]  ;;  %v4530_v29 = vld [vmem:[%s7869_s3 + $0x200] sm:$0xf] }
  0xe1   :  { %1793 = vmatpush.bf16.msra.mxu1 %v3903_v52  ;;  %v1518_v48 = vadd.f32 %v1517_v31, %v1504_v40  ;;  %v4291_v52 = vor.u32 %v5213_v45, %v4290_v11  ;;  %v4611_v31 = vor.u32 %v5293_v25, %v4610_v24  ;;  %v4340_v11 = vld [vmem:[%s7869_s3 + $0x90] sm:$0xf0]  ;;  %v4595_v45 = vor.u32 %v5289_v39, %v4594_v38 }
  0xe2   :  { %1807 = vmatpush.bf16.msra.mxu2 %v4031_v53  ;;  %v1531_v0 = vpop.f32.mrf.mxu2  ;;  %v4274_v53 = vld [vmem:[%s7869_s3] sm:$0xf]  ;;  %v4420_v24 = vld [vmem:[%s7869_s3 + $0x130] sm:$0xf0] }
  0xe3   :  { %1821 = vmatpush.bf16.msra.mxu3 %v4159_v54  ;;  %1780 = vmatmul.bf16.vlgmr.msra.gmra.mxu0 %v5773_v23  ;;  %v5261_v23 = vld [vmem:[%s7869_s3 + $0x1ac] sm:$0xf0]  ;;  %v4644_v38 = vld [vmem:[%s7869_s3 + $0x2f0] sm:$0xf0] }
  0xe4   :  { %2618 = vmatpush.bf16.msrb.mxu0 %v4387_v55  ;;  %1794 = vmatmul.bf16.vlgmr.msra.gmra.mxu1 %v5923_v37  ;;  %v4483_v37 = vor.u32 %v5261_v23, %v4482_v9  ;;  %v1571_v51 = vpop.f32.mrf.mxu1  ;;  %v5209_v54 = vld [vmem:[%s7869_s3 + $0xc] sm:$0xf0]  ;;  %v1532_v55 = vadd.f32 %v1531_v0, %v1518_v48  ;;  %v4403_v23 = vor.u32 %v5241_v63, %v4402_v59  ;;  %v5255_v0 = vld [vmem:[%s7869_s3 + $0x184] sm:$0xf]  ;;  %v4404_v39 = vld [vmem:[%s7869_s3 + $0x110] sm:$0xf0] }
  0xe5   :  { %2632 = vmatpush.bf16.msrb.mxu1 %v4515_v56  ;;  %1808 = vmatmul.bf16.vlgmr.msra.gmra.mxu2 %v5936_v42  ;;  %v4338_v42 = vld [vmem:[%s7869_s3 + $0x80] sm:$0xf]  ;;  %v1545_v56 = vpop.f32.mrf.mxu3  ;;  %v4275_v62 = vor.u32 %v5209_v54, %v4274_v53  ;;  %v4471_v53 = vor.u32 %v5255_v0, %v4468_v46  ;;  %v5251_v59 = vld [vmem:[%s7869_s3 + $0x164] sm:$0xf]  ;;  %v5270_v0 = vld [vmem:[%s7869_s3 + $0x1f4] sm:$0xf0] }
  0xe6   :  { %1822 = vmatmul.bf16.vlgmr.msra.gmra.mxu3 %v5934_v41  ;;  %v5257_v41 = vld [vmem:[%s7869_s3 + $0x18c] sm:$0xf0]  ;;  %v4339_v19 = vor.u32 %v5225_v15, %v4338_v42  ;;  %v1557_v49 = vpop.f32.mrf.mxu0  ;;  %v1832_v9 = vmax.f32 %v1532_v55, 0.0  ;;  %v1828_v15 = vmax.f32 %v1530_v5, 0.0  ;;  %v1546_v22 = vadd.f32 %v1545_v56, %v273_v50  ;;  %v4578_v50 = vld [vmem:[%s7869_s3 + $0x260] sm:$0xf] }
  0xe7   :  { %v4467_v20 = vor.u32 %v5257_v41, %v4466_v2  ;;  %v5297_v42 = vld [vmem:[%s7869_s3 + $0x2cc] sm:$0xf0]  ;;  %v5263_v41 = vld [vmem:[%s7869_s3 + $0x1c4] sm:$0xf]  ;;  %v1558_v18 = vadd.f32 %v1557_v49, %v1544_v8  ;;  %v4324_v56 = vld [vmem:[%s7869_s3 + $0x70] sm:$0xf0] }
  0xe8   :  { %2619 = vmatpush.bf16.msrb.mxu0 %v4371_v4  ;;  %v4643_v4 = vor.u32 %v5301_v61, %v4642_v60  ;;  %v4627_v17 = vor.u32 %v5297_v42, %v4626_v12  ;;  %v4503_v27 = vor.u32 %v5263_v41, %v4500_v16  ;;  %v5219_v55 = vld [vmem:[%s7869_s3 + $0x64] sm:$0xf]  ;;  %v4452_v60 = vld [vmem:[%s7869_s3 + $0x170] sm:$0xf0]  ;;  %v4562_v5 = vld [vmem:[%s7869_s3 + $0x240] sm:$0xf] }
  0xe9   :  { %2633 = vmatpush.bf16.msrb.mxu1 %v4499_v6  ;;  %v5267_v6 = vld [vmem:[%s7869_s3 + $0x1e4] sm:$0xf]  ;;  %v1572_v35 = vadd.f32 %v1571_v51, %v1558_v18  ;;  %v5285_v51 = vld [vmem:[%s7869_s3 + $0x26c] sm:$0xf0]  ;;  %v4327_v3 = vor.u32 %v5219_v55, %v4324_v56  ;;  %v4455_v8 = vor.u32 %v5251_v59, %v4452_v60  ;;  %v4546_v42 = vld [vmem:[%s7869_s3 + $0x220] sm:$0xf] }
  0xea   :  { %2646 = vmatpush.bf16.msrb.mxu2 %v4643_v4  ;;  %v4519_v13 = vor.u32 %v5267_v6, %v4516_v7  ;;  %v1585_v2 = vpop.f32.mrf.mxu2  ;;  %v5215_v4 = vld [vmem:[%s7869_s3 + $0x44] sm:$0xf]  ;;  %v5281_v6 = vld [vmem:[%s7869_s3 + $0x24c] sm:$0xf0]  ;;  %v4292_v18 = vld [vmem:[%s7869_s3 + $0x30] sm:$0xf0] }
  0xeb   :  { %v1586_v57 = vadd.f32 %v1585_v2, %v1572_v35  ;;  %v4770_v59 = vld [vmem:[%s7869_s3 + $0x3e0] sm:$0xf]  ;;  %v5333_v60 = vld [vmem:[%s7869_s3 + $0x3ec] sm:$0xf0] }
  0xec   :  { %2620 = vmatpush.bf16.msrb.mxu0 %v4355_v14  ;;  %v5231_v14 = vld [vmem:[%s7869_s3 + $0xc4] sm:$0xf]  ;;  %v1573_v26 = vpop.f32.mrf.mxu1 }
  0xed   :  { %2634 = vmatpush.bf16.msrb.mxu1 %v4483_v37  ;;  %v4372_v37 = vld [vmem:[%s7869_s3 + $0xd0] sm:$0xf0] }
  0xee   :  { %v4375_v21 = vor.u32 %v5231_v14, %v4372_v37  ;;  %2647 = vmatpush.bf16.msrb.mxu2 %v4627_v17  ;;  %v5211_v17 = vld [vmem:[%s7869_s3 + $0x24] sm:$0xf] }
  0xf0   :  { %2621 = vmatpush.bf16.msrb.mxu0 %v4339_v19  ;;  %v7031_v19 = vpack.c.bf16 %v1832_v9, %v1828_v15  ;;  %v5247_v9 = vld [vmem:[%s7869_s3 + $0x144] sm:$0xf]  ;;  %v5277_v15 = vld [vmem:[%s7869_s3 + $0x22c] sm:$0xf0] }
  0xf1   :  { %2635 = vmatpush.bf16.msrb.mxu1 %v4467_v20  ;;  %v1559_v20 = vpop.f32.mrf.mxu0 }
  0xf2   :  { %v1560_v40 = vadd.f32 %v1559_v20, %v1546_v22  ;;  %2648 = vmatpush.bf16.msrb.mxu2 %v4611_v31  ;;  %v1587_v47 = vpop.f32.mrf.mxu2  ;;  %v4547_v20 = vor.u32 %v5277_v15, %v4546_v42  ;;  %v5207_v22 = vld [vmem:[%s7869_s3 + $0x4] sm:$0xf]  ;;  %v5273_v31 = vld [vmem:[%s7869_s3 + $0x20c] sm:$0xf0]  ;;  %v4474_v42 = vld [vmem:[%s7869_s3 + $0x188] sm:$0xf] }
  0xf3   :  { %v4531_v35 = vor.u32 %v5273_v31, %v4530_v29  ;;  %v5258_v15 = vld [vmem:[%s7869_s3 + $0x194] sm:$0xf0] }
  0xf4   :  { %2622 = vmatpush.bf16.msrb.mxu0 %v4323_v32  ;;  %v1599_v32 = vpop.f32.mrf.mxu3 }
  0xf5   :  { %2636 = vmatpush.bf16.msrb.mxu1 %v4451_v33  ;;  %v5259_v33 = vld [vmem:[%s7869_s3 + $0x1a4] sm:$0xf]  ;;  %v1600_v61 = vadd.f32 %v1599_v32, %v1586_v57  ;;  %v4407_v57 = vor.u32 %v5239_v28, %v4404_v39  ;;  %v5254_v28 = vld [vmem:[%s7869_s3 + $0x174] sm:$0xf0] }
  0xf6   :  { %2649 = vmatpush.bf16.msrb.mxu2 %v4595_v45  ;;  %v4522_v45 = vld [vmem:[%s7869_s3 + $0x1e8] sm:$0xf]  ;;  %v5218_v39 = vld [vmem:[%s7869_s3 + $0x54] sm:$0xf0] }
  0xf8   :  { %2623 = vmatpush.bf16.msrb.mxu0 %v4307_v43  ;;  %v4487_v43 = vor.u32 %v5259_v33, %v4484_v34 }
  0xf9   :  { %2637 = vmatpush.bf16.msrb.mxu1 %v4435_v44  ;;  %v5223_v44 = vld [vmem:[%s7869_s3 + $0x84] sm:$0xf] }
  0xfa   :  { %v4343_v49 = vor.u32 %v5223_v44, %v4340_v11 }
  0xfc   :  { %2624 = vmatpush.bf16.msrb.mxu0 %v4291_v52  ;;  %v1574_v52 = vadd.f32 %v1573_v26, %v1560_v40  ;;  %v1601_v1 = vpop.f32.mrf.mxu3  ;;  %v4276_v26 = vld [vmem:[%s7869_s3 + $0x10] sm:$0xf0]  ;;  %v4394_v40 = vld [vmem:[%s7869_s3 + $0xe8] sm:$0xf] }
  0xfd   :  { %2638 = vmatpush.bf16.msrb.mxu1 %v4419_v58  ;;  %v4579_v58 = vor.u32 %v5285_v51, %v4578_v50  ;;  %v4279_v46 = vor.u32 %v5207_v22, %v4276_v26  ;;  %v4378_v50 = vld [vmem:[%s7869_s3 + $0xc8] sm:$0xf]  ;;  %v5234_v51 = vld [vmem:[%s7869_s3 + $0xd4] sm:$0xf0]  ;;  %v5283_v22 = vld [vmem:[%s7869_s3 + $0x264] sm:$0xf] }
  0xfe   :  { %v1588_v63 = vadd.f32 %v1587_v47, %v1574_v52  ;;  %v4628_v52 = vld [vmem:[%s7869_s3 + $0x2d0] sm:$0xf0]  ;;  %v4379_v56 = vor.u32 %v5234_v51, %v4378_v50  ;;  %v5214_v50 = vld [vmem:[%s7869_s3 + $0x34] sm:$0xf0] }
  0xff   :  { %2650 = vmatpush.bf16.msrb.mxu2 %v4579_v58  ;;  %v4362_v58 = vld [vmem:[%s7869_s3 + $0xa8] sm:$0xf]  ;;  %v4580_v26 = vld [vmem:[%s7869_s3 + $0x270] sm:$0xf0] }
 0x100   :  { %2625 = vmatpush.bf16.msrb.mxu0 %v4275_v62  ;;  %v1613_v48 = vpop.f32.mrf.mxu0  ;;  %v4308_v62 = vld [vmem:[%s7869_s3 + $0x50] sm:$0xf0]  ;;  %v1602_v12 = vadd.f32 %v1601_v1, %v1588_v63  ;;  %v5230_v63 = vld [vmem:[%s7869_s3 + $0xb4] sm:$0xf0]  ;;  %v4771_v1 = vor.u32 %v5333_v60, %v4770_v59  ;;  %v4583_v29 = vor.u32 %v5283_v22, %v4580_v26  ;;  %v4282_v60 = vld [vmem:[%s7869_s3 + $0x8] sm:$0xf] }
 0x101   :  { %2639 = vmatpush.bf16.msrb.mxu1 %v4403_v23  ;;  %v1627_v54 = vpop.f32.mrf.mxu1  ;;  %v1614_v7 = vadd.f32 %v1613_v48, %v1600_v61  ;;  %v4436_v23 = vld [vmem:[%s7869_s3 + $0x150] sm:$0xf0]  ;;  %v4311_v14 = vor.u32 %v5215_v4, %v4308_v62  ;;  %v5295_v48 = vld [vmem:[%s7869_s3 + $0x2c4] sm:$0xf]  ;;  %v4754_v62 = vld [vmem:[%s7869_s3 + $0x3c0] sm:$0xf] }
 0x102   :  { %v4439_v37 = vor.u32 %v5247_v9, %v4436_v23  ;;  %v4631_v55 = vor.u32 %v5295_v48, %v4628_v52  ;;  %v4612_v4 = vld [vmem:[%s7869_s3 + $0x2b0] sm:$0xf0]  ;;  %2660 = vmatpush.bf16.msrb.mxu3 %v4771_v1  ;;  %v5329_v9 = vld [vmem:[%s7869_s3 + $0x3cc] sm:$0xf0]  ;;  %v5287_v23 = vld [vmem:[%s7869_s3 + $0x284] sm:$0xf] }
 0x103   :  { %2626 = vmatmul.bf16.vlgmr.msrb.gmra.mxu0 %v7031_v19  ;;  %v1628_v2 = vadd.f32 %v1627_v54, %v1614_v7  ;;  %v5266_v54 = vld [vmem:[%s7869_s3 + $0x1d4] sm:$0xf0]  ;;  %v5317_v48 = vld [vmem:[%s7869_s3 + $0x36c] sm:$0xf0]  ;;  %v5275_v52 = vld [vmem:[%s7869_s3 + $0x224] sm:$0xf] }
 0x104   :  { %2674 = vmatpush.bf16.msra.mxu0 %v4391_v10  ;;  %v4563_v10 = vor.u32 %v5281_v6, %v4562_v5  ;;  %v4490_v5 = vld [vmem:[%s7869_s3 + $0x1a8] sm:$0xf]  ;;  %v5262_v6 = vld [vmem:[%s7869_s3 + $0x1b4] sm:$0xf0]  ;;  %v4508_v22 = vld [vmem:[%s7869_s3 + $0x1d8] sm:$0xf0] }
 0x105   :  { %2688 = vmatpush.bf16.msra.mxu1 %v4519_v13  ;;  %v1829_v32 = vmax.f32 %v1628_v2, 0.0  ;;  %v4410_v1 = vld [vmem:[%s7869_s3 + $0x108] sm:$0xf] }
 0x106   :  { %2651 = vmatpush.bf16.msrb.mxu2 %v4563_v10  ;;  %v4491_v10 = vor.u32 %v5262_v6, %v4490_v5  ;;  %v5313_v5 = vld [vmem:[%s7869_s3 + $0x34c] sm:$0xf0]  ;;  %v5271_v6 = vld [vmem:[%s7869_s3 + $0x204] sm:$0xf] }
 0x108   :  { %2675 = vmatpush.bf16.msra.mxu0 %v4375_v21  ;;  %v1615_v13 = vpop.f32.mrf.mxu0  ;;  %v5243_v21 = vld [vmem:[%s7869_s3 + $0x124] sm:$0xf] }
 0x109   :  { %2689 = vmatpush.bf16.msra.mxu1 %v4503_v27  ;;  %v1616_v41 = vadd.f32 %v1615_v13, %v1602_v12  ;;  %v1629_v16 = vpop.f32.mrf.mxu1  ;;  %v4295_v27 = vor.u32 %v5211_v17, %v4292_v18  ;;  %v4423_v34 = vor.u32 %v5243_v21, %v4420_v24  ;;  %v4346_v12 = vld [vmem:[%s7869_s3 + $0x88] sm:$0xf]  ;;  %v5226_v13 = vld [vmem:[%s7869_s3 + $0x94] sm:$0xf0]  ;;  %v4738_v17 = vld [vmem:[%s7869_s3 + $0x3a0] sm:$0xf]  ;;  %v4475_v21 = vor.u32 %v5258_v15, %v4474_v42 }
 0x10a   :  { %2652 = vmatpush.bf16.msrb.mxu2 %v4547_v20  ;;  %v5325_v18 = vld [vmem:[%s7869_s3 + $0x3ac] sm:$0xf0]  ;;  %v7239_v20 = vpop.f32.mrf.mxu2  ;;  %v5222_v24 = vld [vmem:[%s7869_s3 + $0x74] sm:$0xf0]  ;;  %v4674_v15 = vld [vmem:[%s7869_s3 + $0x320] sm:$0xf] }
 0x10b   :  { %v1630_v25 = vadd.f32 %v1629_v16, %v1616_v41  ;;  %v4347_v41 = vor.u32 %v5226_v13, %v4346_v12  ;;  %v4330_v16 = vld [vmem:[%s7869_s3 + $0x68] sm:$0xf]  ;;  %v5268_v13 = vld [vmem:[%s7869_s3 + $0x1ec] sm:$0xf] }
 0x10c   :  { %2676 = vmatpush.bf16.msra.mxu0 %v4359_v36  ;;  %v5299_v36 = vld [vmem:[%s7869_s3 + $0x2e4] sm:$0xf]  ;;  %v4331_v31 = vor.u32 %v5222_v24, %v4330_v16 }
 0x10d   :  { %2690 = vmatpush.bf16.msra.mxu1 %v4487_v43  ;;  %v1833_v33 = vmax.f32 %v1630_v25, 0.0  ;;  %v5238_v43 = vld [vmem:[%s7869_s3 + $0xf4] sm:$0xf0]  ;;  %v4647_v44 = vor.u32 %v5299_v36, %v4644_v38  ;;  %v4739_v25 = vor.u32 %v5325_v18, %v4738_v17  ;;  %v4314_v38 = vld [vmem:[%s7869_s3 + $0x48] sm:$0xf] }
 0x10e   :  { %v4395_v47 = vor.u32 %v5238_v43, %v4394_v40  ;;  %2653 = vmatpush.bf16.msrb.mxu2 %v4531_v35  ;;  %v7265_v35 = vpop.f32.mrf.mxu3  ;;  %v4564_v43 = vld [vmem:[%s7869_s3 + $0x250] sm:$0xf0] }
 0x10f   :  { %v7154_v11 = vpack.c.bf16 %v1833_v33, %v1829_v32  ;;  %v4722_v32 = vld [vmem:[%s7869_s3 + $0x380] sm:$0xf]  ;;  %v5321_v33 = vld [vmem:[%s7869_s3 + $0x38c] sm:$0xf0] }
 0x110   :  { %2677 = vmatpush.bf16.msra.mxu0 %v4343_v49  ;;  %v4523_v49 = vor.u32 %v5270_v0, %v4522_v45  ;;  %v4723_v40 = vor.u32 %v5321_v33, %v4722_v32  ;;  %v5250_v45 = vld [vmem:[%s7869_s3 + $0x154] sm:$0xf0] }
 0x111   :  { %2691 = vmatpush.bf16.msra.mxu1 %v4471_v53  ;;  %v4506_v53 = vld [vmem:[%s7869_s3 + $0x1c8] sm:$0xf] }
 0x112   :  { %2640 = vmatmul.bf16.vlgmr.msrb.gmra.mxu1 %v7154_v11  ;;  %2702 = vmatpush.bf16.msra.mxu2 %v4647_v44  ;;  %v4507_v61 = vor.u32 %v5266_v54, %v4506_v53  ;;  %v4442_v44 = vld [vmem:[%s7869_s3 + $0x148] sm:$0xf]  ;;  %v4548_v53 = vld [vmem:[%s7869_s3 + $0x230] sm:$0xf0]  ;;  %v1643_v59 = vpop.f32.mrf.mxu2 }
 0x113   :  { %v4426_v54 = vld [vmem:[%s7869_s3 + $0x128] sm:$0xf] }
 0x114   :  { %2678 = vmatpush.bf16.msra.mxu0 %v4327_v3  ;;  %v5291_v3 = vld [vmem:[%s7869_s3 + $0x2a4] sm:$0xf] }
 0x115   :  { %2692 = vmatpush.bf16.msra.mxu1 %v4455_v8  ;;  %v4615_v7 = vor.u32 %v5291_v3, %v4612_v4  ;;  %v4363_v8 = vor.u32 %v5230_v63, %v4362_v58  ;;  %v274_v58 = vperm.slane %v6861_v30, 2  ;;  %v5210_v63 = vld [vmem:[%s7869_s3 + $0x14] sm:$0xf0]  ;;  %v4690_v30 = vld [vmem:[%s7869_s3 + $0x340] sm:$0xf] }
 0x116   :  { %2703 = vmatpush.bf16.msra.mxu2 %v4631_v55  ;;  %v5246_v55 = vld [vmem:[%s7869_s3 + $0x134] sm:$0xf0]  ;;  %v1657_v12 = vpop.f32.mrf.mxu3  ;;  %v4283_v42 = vor.u32 %v5210_v63, %v4282_v60  ;;  %v4740_v63 = vld [vmem:[%s7869_s3 + $0x3b0] sm:$0xf0] }
 0x117   :  { %v4427_v4 = vor.u32 %v5246_v55, %v4426_v54  ;;  %v5256_v54 = vld [vmem:[%s7869_s3 + $0x18c] sm:$0xf]  ;;  %v4476_v55 = vld [vmem:[%s7869_s3 + $0x198] sm:$0xf0] }
 0x118   :  { %2679 = vmatpush.bf16.msra.mxu0 %v4311_v14  ;;  %v4755_v14 = vor.u32 %v5329_v9, %v4754_v62  ;;  %v5236_v62 = vld [vmem:[%s7869_s3 + $0xec] sm:$0xf]  ;;  %v4396_v9 = vld [vmem:[%s7869_s3 + $0xf8] sm:$0xf0] }
 0x119   :  { %2693 = vmatpush.bf16.msra.mxu1 %v4439_v37  ;;  %v4596_v37 = vld [vmem:[%s7869_s3 + $0x290] sm:$0xf0]  ;;  %v4399_v16 = vor.u32 %v5236_v62, %v4396_v9 }
 0x11a   :  { %2704 = vmatpush.bf16.msra.mxu2 %v4615_v7  ;;  %v4599_v2 = vor.u32 %v5287_v23, %v4596_v37  ;;  %2661 = vmatpush.bf16.msrb.mxu3 %v4755_v14  ;;  %v4532_v7 = vld [vmem:[%s7869_s3 + $0x210] sm:$0xf0]  ;;  %v4691_v23 = vor.u32 %v5313_v5, %v4690_v30  ;;  %v4524_v14 = vld [vmem:[%s7869_s3 + $0x1f8] sm:$0xf0]  ;;  %v1642_v37 = vadd.f32 %v7239_v20, %v274_v58  ;;  %v5232_v20 = vld [vmem:[%s7869_s3 + $0xcc] sm:$0xf] }
 0x11b   :  { %v4527_v18 = vor.u32 %v5268_v13, %v4524_v14  ;;  %v5220_v30 = vld [vmem:[%s7869_s3 + $0x6c] sm:$0xf] }
 0x11c   :  { %2680 = vmatpush.bf16.msra.mxu0 %v4295_v27  ;;  %v4458_v27 = vld [vmem:[%s7869_s3 + $0x168] sm:$0xf]  ;;  %v1656_v26 = vadd.f32 %v7265_v35, %v1642_v37  ;;  %v4772_v35 = vld [vmem:[%s7869_s3 + $0x3f0] sm:$0xf0]  ;;  %v5216_v37 = vld [vmem:[%s7869_s3 + $0x4c] sm:$0xf] }
 0x11d   :  { %2694 = vmatpush.bf16.msra.mxu1 %v4423_v34  ;;  %v5279_v34 = vld [vmem:[%s7869_s3 + $0x244] sm:$0xf]  ;;  %v4459_v36 = vor.u32 %v5254_v28, %v4458_v27  ;;  %v1644_v27 = vadd.f32 %v1643_v59, %v274_v58  ;;  %v4658_v28 = vld [vmem:[%s7869_s3 + $0x300] sm:$0xf] }
 0x11e   :  { %2705 = vmatpush.bf16.msra.mxu2 %v4599_v2  ;;  %2662 = vmatpush.bf16.msrb.mxu3 %v4739_v25  ;;  %v4567_v0 = vor.u32 %v5279_v34, %v4564_v43  ;;  %v5309_v2 = vld [vmem:[%s7869_s3 + $0x32c] sm:$0xf0]  ;;  %v5264_v25 = vld [vmem:[%s7869_s3 + $0x1cc] sm:$0xf]  ;;  %v5331_v34 = vld [vmem:[%s7869_s3 + $0x3e4] sm:$0xf] }
 0x11f   :  { %v4675_v17 = vor.u32 %v5309_v2, %v4674_v15  ;;  %v4775_v43 = vor.u32 %v5331_v34, %v4772_v35  ;;  %v4650_v34 = vld [vmem:[%s7869_s3 + $0x2e8] sm:$0xf]  ;;  %v5302_v35 = vld [vmem:[%s7869_s3 + $0x2f4] sm:$0xf0] }
 0x120   :  { %2681 = vmatpush.bf16.msra.mxu0 %v4279_v46  ;;  %v4315_v46 = vor.u32 %v5218_v39, %v4314_v38  ;;  %v1669_v3 = vpop.f32.mrf.mxu0  ;;  %v5228_v38 = vld [vmem:[%s7869_s3 + $0xac] sm:$0xf]  ;;  %v4364_v39 = vld [vmem:[%s7869_s3 + $0xb8] sm:$0xf0] }
 0x121   :  { %2695 = vmatpush.bf16.msra.mxu1 %v4407_v57  ;;  %v4298_v57 = vld [vmem:[%s7869_s3 + $0x28] sm:$0xf]  ;;  %v1683_v24 = vpop.f32.mrf.mxu1 }
 0x122   :  { %2706 = vmatpush.bf16.msra.mxu2 %v4583_v29  ;;  %2663 = vmatpush.bf16.msrb.mxu3 %v4723_v40  ;;  %v5305_v29 = vld [vmem:[%s7869_s3 + $0x30c] sm:$0xf0]  ;;  %v5260_v40 = vld [vmem:[%s7869_s3 + $0x1ac] sm:$0xf] }
 0x123   :  { %2682 = vmatmul.bf16.vlgmr.msra.gmra.mxu0 %v7031_v19  ;;  %v4659_v33 = vor.u32 %v5305_v29, %v4658_v28 }
 0x124   :  { %2730 = vmatpush.bf16.msrb.mxu0 %v4395_v47  ;;  %2696 = vmatmul.bf16.vlgmr.msra.gmra.mxu1 %v7154_v11  ;;  %v4706_v47 = vld [vmem:[%s7869_s3 + $0x360] sm:$0xf] }
 0x125   :  { %2744 = vmatpush.bf16.msrb.mxu1 %v4523_v49  ;;  %v4443_v49 = vor.u32 %v5250_v45, %v4442_v44  ;;  %v4707_v51 = vor.u32 %v5317_v48, %v4706_v47  ;;  %v4492_v45 = vld [vmem:[%s7869_s3 + $0x1b8] sm:$0xf0]  ;;  %v1670_v47 = vadd.f32 %v1669_v3, %v1656_v26  ;;  %v5212_v26 = vld [vmem:[%s7869_s3 + $0x2c] sm:$0xf] }
 0x126   :  { %2707 = vmatpush.bf16.msra.mxu2 %v4567_v0  ;;  %v5327_v0 = vld [vmem:[%s7869_s3 + $0x3c4] sm:$0xf]  ;;  %v4332_v3 = vld [vmem:[%s7869_s3 + $0x78] sm:$0xf0] }
 0x127   :  { %2664 = vmatpush.bf16.msrb.mxu3 %v4707_v51  ;;  %v4495_v51 = vor.u32 %v5260_v40, %v4492_v45  ;;  %v5208_v45 = vld [vmem:[%s7869_s3 + $0xc] sm:$0xf] }
 0x128   :  { %2731 = vmatpush.bf16.msrb.mxu0 %v4379_v56  ;;  %v4551_v56 = vor.u32 %v5275_v52, %v4548_v53  ;;  %v1671_v44 = vpop.f32.mrf.mxu0  ;;  %v5224_v52 = vld [vmem:[%s7869_s3 + $0x8c] sm:$0xf]  ;;  %v4348_v53 = vld [vmem:[%s7869_s3 + $0x98] sm:$0xf0] }
 0x129   :  { %2745 = vmatpush.bf16.msrb.mxu1 %v4507_v61  ;;  %v4299_v61 = vor.u32 %v5214_v50, %v4298_v57  ;;  %v1658_v57 = vadd.f32 %v1657_v12, %v1644_v27  ;;  %v1711_v48 = vpop.f32.mrf.mxu3  ;;  %v1685_v59 = vpop.f32.mrf.mxu1  ;;  %v4351_v60 = vor.u32 %v5224_v52, %v4348_v53  ;;  %v4724_v12 = vld [vmem:[%s7869_s3 + $0x390] sm:$0xf0]  ;;  %v4300_v27 = vld [vmem:[%s7869_s3 + $0x38] sm:$0xf0] }
 0x12a   :  { %2708 = vmatpush.bf16.msra.mxu2 %v4551_v56  ;;  %v1684_v56 = vadd.f32 %v1683_v24, %v1670_v47  ;;  %v5240_v47 = vld [vmem:[%s7869_s3 + $0x10c] sm:$0xf] }
 0x12b   :  { %2665 = vmatpush.bf16.msrb.mxu3 %v4691_v23  ;;  %v1672_v58 = vadd.f32 %v1671_v44, %v1658_v57  ;;  %v4335_v23 = vor.u32 %v5220_v30, %v4332_v3  ;;  %v4651_v57 = vor.u32 %v5302_v35, %v4650_v34  ;;  %v4660_v30 = vld [vmem:[%s7869_s3 + $0x310] sm:$0xf0]  ;;  %v4652_v34 = vld [vmem:[%s7869_s3 + $0x2f8] sm:$0xf0] }
 0x12c   :  { %2732 = vmatpush.bf16.msrb.mxu0 %v4363_v8  ;;  %v5242_v8 = vld [vmem:[%s7869_s3 + $0x114] sm:$0xf0] }
 0x12d   :  { %2746 = vmatpush.bf16.msrb.mxu1 %v4491_v10  ;;  %v4535_v10 = vor.u32 %v5271_v6, %v4532_v7  ;;  %v5252_v7 = vld [vmem:[%s7869_s3 + $0x16c] sm:$0xf]  ;;  %v1686_v9 = vadd.f32 %v1685_v59, %v1672_v58 }
 0x12f   :  { %2709 = vmatpush.bf16.msra.mxu2 %v4535_v10  ;;  %2666 = vmatpush.bf16.msrb.mxu3 %v4675_v17  ;;  %v5319_v10 = vld [vmem:[%s7869_s3 + $0x384] sm:$0xf] }
 0x130   :  { %2733 = vmatpush.bf16.msrb.mxu0 %v4347_v41  ;;  %v4411_v41 = vor.u32 %v5242_v8, %v4410_v1  ;;  %v4479_v1 = vor.u32 %v5256_v54, %v4476_v55  ;;  %v4460_v8 = vld [vmem:[%s7869_s3 + $0x178] sm:$0xf0]  ;;  %v4727_v15 = vor.u32 %v5319_v10, %v4724_v12  ;;  %v5307_v54 = vld [vmem:[%s7869_s3 + $0x324] sm:$0xf]  ;;  %v4676_v55 = vld [vmem:[%s7869_s3 + $0x330] sm:$0xf0] }
 0x131   :  { %2747 = vmatpush.bf16.msrb.mxu1 %v4475_v21  ;;  %v4380_v21 = vld [vmem:[%s7869_s3 + $0xd8] sm:$0xf0]  ;;  %v4463_v14 = vor.u32 %v5252_v7, %v4460_v8  ;;  %v1713_v2 = vpop.f32.mrf.mxu3  ;;  %v4679_v58 = vor.u32 %v5307_v54, %v4676_v55  ;;  %v4602_v8 = vld [vmem:[%s7869_s3 + $0x288] sm:$0xf]  ;;  %v5334_v55 = vld [vmem:[%s7869_s3 + $0x3f4] sm:$0xf0] }
 0x132   :  { %v4383_v32 = vor.u32 %v5232_v20, %v4380_v21  ;;  %v5315_v20 = vld [vmem:[%s7869_s3 + $0x364] sm:$0xf]  ;;  %v4708_v21 = vld [vmem:[%s7869_s3 + $0x370] sm:$0xf0]  ;;  %v4586_v12 = vld [vmem:[%s7869_s3 + $0x268] sm:$0xf] }
 0x133   :  { %2667 = vmatpush.bf16.msrb.mxu3 %v4659_v33  ;;  %v4711_v28 = vor.u32 %v5315_v20, %v4708_v21  ;;  %v4554_v21 = vld [vmem:[%s7869_s3 + $0x228] sm:$0xf] }
 0x134   :  { %2734 = vmatpush.bf16.msrb.mxu0 %v4331_v31  ;;  %v1697_v31 = vpop.f32.mrf.mxu2  ;;  %v4778_v54 = vld [vmem:[%s7869_s3 + $0x3e8] sm:$0xf] }
 0x135   :  { %2748 = vmatpush.bf16.msrb.mxu1 %v4459_v36  ;;  %v4511_v36 = vor.u32 %v5264_v25, %v4508_v22  ;;  %v1698_v62 = vadd.f32 %v1697_v31, %v1684_v56  ;;  %v5244_v31 = vld [vmem:[%s7869_s3 + $0x12c] sm:$0xf] }
 0x137   :  { %2716 = vmatpush.bf16.msra.mxu3 %v4775_v43  ;;  %v1712_v17 = vadd.f32 %v1711_v48, %v1698_v62  ;;  %v4412_v48 = vld [vmem:[%s7869_s3 + $0x118] sm:$0xf0]  ;;  %v5290_v62 = vld [vmem:[%s7869_s3 + $0x294] sm:$0xf0] }
 0x138   :  { %2735 = vmatpush.bf16.msrb.mxu0 %v4315_v46  ;;  %v4756_v46 = vld [vmem:[%s7869_s3 + $0x3d0] sm:$0xf0]  ;;  %v4415_v56 = vor.u32 %v5240_v47, %v4412_v48 }
 0x139   :  { %2749 = vmatpush.bf16.msrb.mxu1 %v4443_v49  ;;  %v4367_v49 = vor.u32 %v5228_v38, %v4364_v39  ;;  %v4759_v50 = vor.u32 %v5327_v0, %v4756_v46  ;;  %v5311_v38 = vld [vmem:[%s7869_s3 + $0x344] sm:$0xf]  ;;  %v4692_v39 = vld [vmem:[%s7869_s3 + $0x350] sm:$0xf0]  ;;  %v4284_v0 = vld [vmem:[%s7869_s3 + $0x18] sm:$0xf0] }
 0x13a   :  { %v4695_v46 = vor.u32 %v5311_v38, %v4692_v39  ;;  %v4287_v53 = vor.u32 %v5208_v45, %v4284_v0  ;;  %v4636_v45 = vld [vmem:[%s7869_s3 + $0x2d8] sm:$0xf0] }
 0x13b   :  { %2717 = vmatpush.bf16.msra.mxu3 %v4759_v50  ;;  %v4634_v50 = vld [vmem:[%s7869_s3 + $0x2c8] sm:$0xf] }
 0x13c   :  { %2736 = vmatpush.bf16.msrb.mxu0 %v4299_v61  ;;  %v5323_v61 = vld [vmem:[%s7869_s3 + $0x3a4] sm:$0xf]  ;;  %v1699_v5 = vpop.f32.mrf.mxu2 }
 0x13d   :  { %2750 = vmatpush.bf16.msrb.mxu1 %v4427_v4  ;;  %v4743_v4 = vor.u32 %v5323_v61, %v4740_v63  ;;  %v1700_v13 = vadd.f32 %v1699_v5, %v1686_v9  ;;  %v5294_v61 = vld [vmem:[%s7869_s3 + $0x2b4] sm:$0xf0] }
 0x13f   :  { %2718 = vmatpush.bf16.msra.mxu3 %v4743_v4  ;;  %v1714_v24 = vadd.f32 %v1713_v2, %v1700_v13  ;;  %v4570_v2 = vld [vmem:[%s7869_s3 + $0x248] sm:$0xf] }
 0x140   :  { %2737 = vmatpush.bf16.msrb.mxu0 %v4283_v42  ;;  %v1725_v6 = vpop.f32.mrf.mxu0  ;;  %v4316_v42 = vld [vmem:[%s7869_s3 + $0x58] sm:$0xf0] }
 0x141   :  { %2751 = vmatpush.bf16.msrb.mxu1 %v4411_v41  ;;  %v5248_v41 = vld [vmem:[%s7869_s3 + $0x14c] sm:$0xf]  ;;  %v1726_v25 = vadd.f32 %v1725_v6, %v1712_v17  ;;  %v1739_v52 = vpop.f32.mrf.mxu1  ;;  %v5391_v6 = vld [vmem:[%s7868_s2] sm:$0xf] }
 0x142   :  { %v275_v7 = vperm.slane %v5391_v6, 3  ;;  %v5284_v6 = vld [vmem:[%s7869_s3 + $0x26c] sm:$0xf] }
 0x143   :  { %2738 = vmatmul.bf16.vlgmr.msrb.gmra.mxu0 %v7031_v19  ;;  %2719 = vmatpush.bf16.msra.mxu3 %v4727_v15  ;;  %v1830_v40 = vmax.f32 %v1726_v25, 0.0 }
 0x144   :  { %2786 = vmatpush.bf16.msra.mxu0 %v4399_v16  ;;  %2752 = vmatmul.bf16.vlgmr.msrb.gmra.mxu1 %v7154_v11  ;;  %v4444_v16 = vld [vmem:[%s7869_s3 + $0x158] sm:$0xf0]  ;;  %v1740_v10 = vadd.f32 %v1739_v52, %v275_v7 }
 0x145   :  { %2800 = vmatpush.bf16.msra.mxu1 %v4527_v18  ;;  %v4319_v18 = vor.u32 %v5216_v37, %v4316_v42  ;;  %v4447_v22 = vor.u32 %v5248_v41, %v4444_v16  ;;  %v5282_v41 = vld [vmem:[%s7869_s3 + $0x254] sm:$0xf0]  ;;  %v4620_v52 = vld [vmem:[%s7869_s3 + $0x2b8] sm:$0xf0] }
 0x146   :  { %v4571_v17 = vor.u32 %v5282_v41, %v4570_v2  ;;  %v5318_v2 = vld [vmem:[%s7869_s3 + $0x374] sm:$0xf0] }
 0x147   :  { %2720 = vmatpush.bf16.msra.mxu3 %v4711_v28 }
 0x148   :  { %2787 = vmatpush.bf16.msra.mxu0 %v4383_v32  ;;  %v1727_v29 = vpop.f32.mrf.mxu0  ;;  %v4428_v32 = vld [vmem:[%s7869_s3 + $0x138] sm:$0xf0]  ;;  %v1753_v63 = vpop.f32.mrf.mxu2 }
 0x149   :  { %2801 = vmatpush.bf16.msra.mxu1 %v4511_v36  ;;  %v1728_v33 = vadd.f32 %v1727_v29, %v1714_v24  ;;  %v4303_v36 = vor.u32 %v5212_v26, %v4300_v27  ;;  %v4431_v44 = vor.u32 %v5244_v31, %v4428_v32  ;;  %v1767_v3 = vpop.f32.mrf.mxu3  ;;  %v1741_v9 = vpop.f32.mrf.mxu1  ;;  %v1754_v37 = vadd.f32 %v1753_v63, %v1740_v10  ;;  %v5278_v24 = vld [vmem:[%s7869_s3 + $0x234] sm:$0xf0]  ;;  %v4538_v31 = vld [vmem:[%s7869_s3 + $0x208] sm:$0xf]  ;;  %v4604_v63 = vld [vmem:[%s7869_s3 + $0x298] sm:$0xf0] }
 0x14a   :  { %v1742_v42 = vadd.f32 %v1741_v9, %v275_v7  ;;  %v4555_v26 = vor.u32 %v5278_v24, %v4554_v21  ;;  %v5274_v32 = vld [vmem:[%s7869_s3 + $0x214] sm:$0xf0]  ;;  %v4588_v7 = vld [vmem:[%s7869_s3 + $0x278] sm:$0xf0]  ;;  %v5280_v10 = vld [vmem:[%s7869_s3 + $0x24c] sm:$0xf] }
 0x14b   :  { %v1834_v43 = vmax.f32 %v1728_v33, 0.0  ;;  %2721 = vmatpush.bf16.msra.mxu3 %v4695_v46  ;;  %v5300_v33 = vld [vmem:[%s7869_s3 + $0x2ec] sm:$0xf]  ;;  %v4539_v38 = vor.u32 %v5274_v32, %v4538_v31  ;;  %v4591_v9 = vor.u32 %v5284_v6, %v4588_v7  ;;  %v5314_v21 = vld [vmem:[%s7869_s3 + $0x354] sm:$0xf0]  ;;  %v5335_v6 = vld [vmem:[%s7870_s5] sm:$0xff] }
 0x14c   :  { %2788 = vmatpush.bf16.msra.mxu0 %v4367_v49  ;;  %v5332_v31 = vld [vmem:[%s7869_s3 + $0x3ec] sm:$0xf]  ;;  %v4780_v32 = vld [vmem:[%s7869_s3 + $0x3f8] sm:$0xf0]  ;;  %v5347_v7 = vld [vmem:[%s7870_s5 + $0x60] sm:$0xff] }
 0x14d   :  { %2802 = vmatpush.bf16.msra.mxu1 %v4495_v51  ;;  %v7486_v49 = vpack.c.bf16 %v1834_v43, %v1830_v40  ;;  %v5298_v51 = vld [vmem:[%s7869_s3 + $0x2d4] sm:$0xf0]  ;;  %v4655_v40 = vor.u32 %v5300_v33, %v4652_v34  ;;  %v4783_v34 = vor.u32 %v5332_v31, %v4780_v32 }
 0x14e   :  { %v4635_v59 = vor.u32 %v5298_v51, %v4634_v50  ;;  %v5292_v51 = vld [vmem:[%s7869_s3 + $0x2ac] sm:$0xf] }
 0x14f   :  { %2654 = vmatmul.bf16.vlgmr.msrb.gmra.mxu2 %v7486_v49  ;;  %2722 = vmatpush.bf16.msra.mxu3 %v4679_v58 }
 0x150   :  { %2789 = vmatpush.bf16.msra.mxu0 %v4351_v60  ;;  %2758 = vmatpush.bf16.msrb.mxu2 %v4651_v57  ;;  %v4618_v60 = vld [vmem:[%s7869_s3 + $0x2a8] sm:$0xf]  ;;  %v1755_v13 = vpop.f32.mrf.mxu2 }
 0x151   :  { %2803 = vmatpush.bf16.msra.mxu1 %v4479_v1  ;;  %v5303_v1 = vld [vmem:[%s7869_s3 + $0x304] sm:$0xf]  ;;  %v4619_v5 = vor.u32 %v5294_v61, %v4618_v60  ;;  %v1769_v15 = vpop.f32.mrf.mxu3  ;;  %v1756_v20 = vadd.f32 %v1755_v13, %v1742_v42  ;;  %v4779_v60 = vor.u32 %v5334_v55, %v4778_v54  ;;  %v5288_v61 = vld [vmem:[%s7869_s3 + $0x28c] sm:$0xf]  ;;  %v5322_v13 = vld [vmem:[%s7869_s3 + $0x394] sm:$0xf0] }
 0x152   :  { %v4663_v4 = vor.u32 %v5303_v1, %v4660_v30  ;;  %v4762_v30 = vld [vmem:[%s7869_s3 + $0x3c8] sm:$0xf]  ;;  %v5276_v42 = vld [vmem:[%s7869_s3 + $0x22c] sm:$0xf]  ;;  %v4668_v55 = vld [vmem:[%s7869_s3 + $0x318] sm:$0xf0] }
 0x153   :  { %v1770_v27 = vadd.f32 %v1769_v15, %v1756_v20  ;;  %v4556_v15 = vld [vmem:[%s7869_s3 + $0x238] sm:$0xf0]  ;;  %v4698_v20 = vld [vmem:[%s7869_s3 + $0x348] sm:$0xf]  ;;  %v5304_v54 = vld [vmem:[%s7869_s3 + $0x30c] sm:$0xf] }
 0x154   :  { %2790 = vmatpush.bf16.msra.mxu0 %v4335_v23  ;;  %2759 = vmatpush.bf16.msrb.mxu2 %v4635_v59  ;;  %v4603_v23 = vor.u32 %v5290_v62, %v4602_v8  ;;  %v4623_v59 = vor.u32 %v5292_v51, %v4620_v52  ;;  %v4746_v8 = vld [vmem:[%s7869_s3 + $0x3a8] sm:$0xf]  ;;  %v5326_v62 = vld [vmem:[%s7869_s3 + $0x3b4] sm:$0xf0]  ;;  %v4559_v41 = vor.u32 %v5276_v42, %v4556_v15  ;;  %v5308_v51 = vld [vmem:[%s7869_s3 + $0x32c] sm:$0xf] }
 0x155   :  { %2804 = vmatpush.bf16.msra.mxu1 %v4463_v14  ;;  %2723 = vmatpush.bf16.msra.mxu3 %v4663_v4  ;;  %v4607_v4 = vor.u32 %v5288_v61, %v4604_v63  ;;  %v4684_v52 = vld [vmem:[%s7869_s3 + $0x338] sm:$0xf0]  ;;  %v5339_v61 = vld [vmem:[%s7870_s5 + $0x20] sm:$0xff] }
 0x156   :  { %v5338_v63 = vld [vmem:[%s7870_s5 + $0x18] sm:$0xff] }
 0x158   :  { %2791 = vmatpush.bf16.msra.mxu0 %v4319_v18  ;;  %2760 = vmatpush.bf16.msrb.mxu2 %v4619_v5  ;;  %v1768_v18 = vadd.f32 %v1767_v3, %v1754_v37  ;;  %v5330_v3 = vld [vmem:[%s7869_s3 + $0x3d4] sm:$0xf0] }
 0x159   :  { %2805 = vmatpush.bf16.msra.mxu1 %v4447_v22  ;;  %v4763_v5 = vor.u32 %v5330_v3, %v4762_v30  ;;  %v5337_v30 = vld [vmem:[%s7870_s5 + $0x10] sm:$0xff] }
 0x15a   :  { %v5349_v3 = vld [vmem:[%s7870_s5 + $0x70] sm:$0xff] }
 0x15c   :  { %2792 = vmatpush.bf16.msra.mxu0 %v4303_v36  ;;  %2761 = vmatpush.bf16.msrb.mxu2 %v4603_v23  ;;  %v4747_v23 = vor.u32 %v5326_v62, %v4746_v8  ;;  %v5346_v8 = vld [vmem:[%s7870_s5 + $0x58] sm:$0xff] }
 0x15d   :  { %2806 = vmatpush.bf16.msra.mxu1 %v4431_v44  ;;  %v5296_v44 = vld [vmem:[%s7869_s3 + $0x2cc] sm:$0xf]  ;;  %v5358_v62 = vld [vmem:[%s7870_s5 + $0xb8] sm:$0xff] }
 0x15e   :  { %v4639_v48 = vor.u32 %v5296_v44, %v4636_v45  ;;  %v4732_v44 = vld [vmem:[%s7869_s3 + $0x398] sm:$0xf0] }
 0x15f   :  { %2710 = vmatmul.bf16.vlgmr.msra.gmra.mxu2 %v7486_v49 }
 0x160   :  { %2793 = vmatpush.bf16.msra.mxu0 %v4287_v53 }
 0x161   :  { %2807 = vmatpush.bf16.msra.mxu1 %v4415_v56  ;;  %v1795_v16 = vpop.f32.mrf.mxu1 }
 0x163   :  { %2794 = vmatmul.bf16.vlgmr.msra.gmra.mxu0 %v7031_v19  ;;  %v5286_v19 = vld [vmem:[%s7869_s3 + $0x274] sm:$0xf0] }
 0x164   :  { %2808 = vmatmul.bf16.vlgmr.msra.gmra.mxu1 %v7154_v11  ;;  %v4587_v14 = vor.u32 %v5286_v19, %v4586_v12  ;;  %v1781_v11 = vpop.f32.mrf.mxu0  ;;  %v4572_v12 = vld [vmem:[%s7869_s3 + $0x258] sm:$0xf0]  ;;  %v4730_v19 = vld [vmem:[%s7869_s3 + $0x388] sm:$0xf] }
 0x165   :  { %v1782_v25 = vadd.f32 %v1781_v11, %v1768_v18  ;;  %v4731_v37 = vor.u32 %v5322_v13, %v4730_v19  ;;  %v4714_v11 = vld [vmem:[%s7869_s3 + $0x368] sm:$0xf]  ;;  %v4540_v18 = vld [vmem:[%s7869_s3 + $0x218] sm:$0xf0]  ;;  %v5357_v19 = vld [vmem:[%s7870_s5 + $0xb0] sm:$0xff] }
 0x166   :  { %2762 = vmatpush.bf16.msrb.mxu2 %v4587_v14  ;;  %v4575_v14 = vor.u32 %v5280_v10, %v4572_v12  ;;  %v5345_v12 = vld [vmem:[%s7870_s5 + $0x50] sm:$0xff]  ;;  %v5344_v13 = vld [vmem:[%s7870_s5 + $0x48] sm:$0xff] }
 0x167   :  { %v1796_v35 = vadd.f32 %v1795_v16, %v1782_v25  ;;  %v4715_v16 = vor.u32 %v5318_v2, %v4714_v11  ;;  %v4699_v25 = vor.u32 %v5314_v21, %v4698_v20  ;;  %v5343_v11 = vld [vmem:[%s7870_s5 + $0x40] sm:$0xff] }
 0x168   :  { %v1809_v22 = vpop.f32.mrf.mxu2  ;;  %v5355_v2 = vld [vmem:[%s7870_s5 + $0xa0] sm:$0xff] }
 0x169   :  { %v1823_v28 = vpop.f32.mrf.mxu3  ;;  %v1810_v39 = vadd.f32 %v1809_v22, %v1796_v35  ;;  %v1797_v43 = vpop.f32.mrf.mxu1  ;;  %v4682_v22 = vld [vmem:[%s7869_s3 + $0x328] sm:$0xf]  ;;  %v5328_v35 = vld [vmem:[%s7869_s3 + $0x3cc] sm:$0xf] }
 0x16a   :  { %2763 = vmatpush.bf16.msrb.mxu2 %v4571_v17  ;;  %v5272_v17 = vld [vmem:[%s7869_s3 + $0x20c] sm:$0xf] }
 0x16b   :  { %v1824_v57 = vadd.f32 %v1823_v28, %v1810_v39  ;;  %v4543_v24 = vor.u32 %v5272_v17, %v4540_v18  ;;  %v4666_v28 = vld [vmem:[%s7869_s3 + $0x308] sm:$0xf]  ;;  %v4748_v39 = vld [vmem:[%s7869_s3 + $0x3b8] sm:$0xf0] }
 0x16c   :  { %v1783_v29 = vpop.f32.mrf.mxu0  ;;  %v5354_v17 = vld [vmem:[%s7870_s5 + $0x98] sm:$0xff] }
 0x16d   :  { %v1784_v36 = vadd.f32 %v1783_v29, %v1770_v27  ;;  %v1831_v56 = vmax.f32 %v1824_v57, 0.0  ;;  %v5306_v29 = vld [vmem:[%s7869_s3 + $0x314] sm:$0xf0] }
 0x16e   :  { %2764 = vmatpush.bf16.msrb.mxu2 %v4555_v26  ;;  %v5310_v26 = vld [vmem:[%s7869_s3 + $0x334] sm:$0xf0]  ;;  %v4667_v33 = vor.u32 %v5306_v29, %v4666_v28 }
 0x16f   :  { %v1798_v0 = vadd.f32 %v1797_v43, %v1784_v36  ;;  %v4683_v27 = vor.u32 %v5310_v26, %v4682_v22  ;;  %v4764_v36 = vld [vmem:[%s7869_s3 + $0x3d8] sm:$0xf0]  ;;  %v5320_v43 = vld [vmem:[%s7869_s3 + $0x38c] sm:$0xf]  ;;  %v5353_v22 = vld [vmem:[%s7870_s5 + $0x90] sm:$0xff] }
 0x170   :  { %v1811_v46 = vpop.f32.mrf.mxu2  ;;  %v4735_v45 = vor.u32 %v5320_v43, %v4732_v44 }
 0x171   :  { %v1812_v47 = vadd.f32 %v1811_v46, %v1798_v0  ;;  %v1825_v50 = vpop.f32.mrf.mxu3  ;;  %v5316_v0 = vld [vmem:[%s7869_s3 + $0x36c] sm:$0xf]  ;;  %v4716_v46 = vld [vmem:[%s7869_s3 + $0x378] sm:$0xf0] }
 0x172   :  { %2765 = vmatpush.bf16.msrb.mxu2 %v4539_v38  ;;  %v5324_v38 = vld [vmem:[%s7869_s3 + $0x3ac] sm:$0xf]  ;;  %v4719_v57 = vor.u32 %v5316_v0, %v4716_v46  ;;  %v5365_v0 = vld [vmem:[%s7870_s5 + $0xf0] sm:$0xff] }
 0x173   :  { %v1826_v53 = vadd.f32 %v1825_v50, %v1812_v47  ;;  %v5312_v47 = vld [vmem:[%s7869_s3 + $0x34c] sm:$0xf] }
 0x175   :  { %2766 = vmatmul.bf16.vlgmr.msrb.gmra.mxu2 %v7486_v49  ;;  %v1835_v58 = vmax.f32 %v1826_v53, 0.0  ;;  %v4687_v53 = vor.u32 %v5308_v51, %v4684_v52 }
 0x176   :  { %2814 = vmatpush.bf16.msra.mxu2 %v4655_v40  ;;  %v4751_v40 = vor.u32 %v5324_v38, %v4748_v39  ;;  %v5351_v38 = vld [vmem:[%s7870_s5 + $0x80] sm:$0xff]  ;;  %v5366_v39 = vld [vmem:[%s7870_s5 + $0xf8] sm:$0xff] }
 0x177   :  { %v7580_v1 = vpack.c.bf16 %v1835_v58, %v1831_v56  ;;  %v4671_v56 = vor.u32 %v5304_v54, %v4668_v55  ;;  %v5342_v58 = vld [vmem:[%s7870_s5 + $0x38] sm:$0xff]  ;;  %v5363_v55 = vld [vmem:[%s7870_s5 + $0xe0] sm:$0xff] }
 0x178   :  { %3114 = vmatpush.bf16.msrb.mxu0 %v5342_v58 }
 0x179   :  { %2668 = vmatmul.bf16.vlgmr.msrb.gmra.mxu3 %v7580_v1 }
 0x17a   :  { %2815 = vmatpush.bf16.msra.mxu2 %v4639_v48  ;;  %2772 = vmatpush.bf16.msrb.mxu3 %v4779_v60  ;;  %v4700_v48 = vld [vmem:[%s7869_s3 + $0x358] sm:$0xf0]  ;;  %v5340_v60 = vld [vmem:[%s7870_s5 + $0x28] sm:$0xff] }
 0x17b   :  { %v4703_v50 = vor.u32 %v5312_v47, %v4700_v48  ;;  %v5364_v48 = vld [vmem:[%s7870_s5 + $0xe8] sm:$0xff] }
 0x17e   :  { %2816 = vmatpush.bf16.msra.mxu2 %v4623_v59  ;;  %2773 = vmatpush.bf16.msrb.mxu3 %v4763_v5  ;;  %v5341_v59 = vld [vmem:[%s7870_s5 + $0x30] sm:$0xff]  ;;  %v5348_v5 = vld [vmem:[%s7870_s5 + $0x68] sm:$0xff] }
 0x17f   :  { %3115 = vmatpush.bf16.msrb.mxu0 %v5341_v59 }
 0x182   :  { %2817 = vmatpush.bf16.msra.mxu2 %v4607_v4  ;;  %2774 = vmatpush.bf16.msrb.mxu3 %v4747_v23  ;;  %v5336_v4 = vld [vmem:[%s7870_s5 + $0x8] sm:$0xff] }
 0x183   :  { %3116 = vmatpush.bf16.msrb.mxu0 %v5340_v60 }
 0x186   :  { %2818 = vmatpush.bf16.msra.mxu2 %v4591_v9  ;;  %2775 = vmatpush.bf16.msrb.mxu3 %v4731_v37  ;;  %v2627_v9 = vpop.f32.mrf.mxu0  ;;  %v7758_v37 = vld [vmem:[%s7872_s4] sm:$0xf] }
 0x187   :  { %3117 = vmatpush.bf16.msrb.mxu0 %v5339_v61  ;;  %v1971_v43 = vperm.slane %v7758_v37, 1 }
 0x189   :  { %2724 = vmatmul.bf16.vlgmr.msra.gmra.mxu3 %v7580_v1 }
 0x18a   :  { %2819 = vmatpush.bf16.msra.mxu2 %v4575_v14  ;;  %2776 = vmatpush.bf16.msrb.mxu3 %v4715_v16  ;;  %v5356_v14 = vld [vmem:[%s7870_s5 + $0xa8] sm:$0xff]  ;;  %v1970_v16 = vperm.slane %v7758_v37, 0 }
 0x18b   :  { %3118 = vmatpush.bf16.msrb.mxu0 %v5338_v63 }
 0x18c   :  { %v2628_v20 = vadd.f32 %v2627_v9, %v1970_v16 }
 0x18e   :  { %2820 = vmatpush.bf16.msra.mxu2 %v4559_v41  ;;  %2777 = vmatpush.bf16.msrb.mxu3 %v4699_v25  ;;  %v2629_v42 = vpop.f32.mrf.mxu0 }
 0x18f   :  { %3119 = vmatpush.bf16.msrb.mxu0 %v5337_v30  ;;  %v2641_v23 = vpop.f32.mrf.mxu1 }
 0x190   :  { %v2642_v25 = vadd.f32 %v2641_v23, %v2628_v20 }
 0x192   :  { %2821 = vmatpush.bf16.msra.mxu2 %v4543_v24  ;;  %2778 = vmatpush.bf16.msrb.mxu3 %v4683_v27  ;;  %v2630_v24 = vadd.f32 %v2629_v42, %v1970_v16 }
 0x193   :  { %3120 = vmatpush.bf16.msrb.mxu0 %v5336_v4  ;;  %v5362_v4 = vld [vmem:[%s7870_s5 + $0xd8] sm:$0xff] }
 0x195   :  { %2822 = vmatmul.bf16.vlgmr.msra.gmra.mxu2 %v7486_v49  ;;  %v4767_v49 = vor.u32 %v5328_v35, %v4764_v36 }
 0x196   :  { %2779 = vmatpush.bf16.msrb.mxu3 %v4667_v33  ;;  %3142 = vmatpush.bf16.msrb.mxu2 %v5358_v62  ;;  %v5352_v33 = vld [vmem:[%s7870_s5 + $0x88] sm:$0xff] }
 0x197   :  { %3121 = vmatpush.bf16.msrb.mxu0 %v5335_v6  ;;  %v2643_v15 = vpop.f32.mrf.mxu1 }
 0x198   :  { %v2644_v26 = vadd.f32 %v2643_v15, %v2630_v24 }
 0x199   :  { %2780 = vmatmul.bf16.vlgmr.msrb.gmra.mxu3 %v7580_v1 }
 0x19a   :  { %2828 = vmatpush.bf16.msra.mxu3 %v4783_v34  ;;  %3143 = vmatpush.bf16.msrb.mxu2 %v5357_v19 }
 0x19e   :  { %2829 = vmatpush.bf16.msra.mxu3 %v4767_v49  ;;  %3144 = vmatpush.bf16.msrb.mxu2 %v5356_v14 }
 0x1a0   :  { %v2683_v21 = vpop.f32.mrf.mxu0 }
 0x1a1   :  { %v2697_v27 = vpop.f32.mrf.mxu1  ;;  %v2684_v47 = vadd.f32 %v2683_v21, %v1971_v43 }
 0x1a2   :  { %2830 = vmatpush.bf16.msra.mxu3 %v4751_v40  ;;  %3145 = vmatpush.bf16.msrb.mxu2 %v5355_v2 }
 0x1a3   :  { %v2698_v51 = vadd.f32 %v2697_v27, %v2684_v47  ;;  %v5368_v47 = vld [vmem:[%s7874_s7 + $0x8] sm:$0xff] }
 0x1a6   :  { %2831 = vmatpush.bf16.msra.mxu3 %v4735_v45  ;;  %3146 = vmatpush.bf16.msrb.mxu2 %v5354_v17 }
 0x1a8   :  { %v2685_v40 = vpop.f32.mrf.mxu0 }
 0x1a9   :  { %v2699_v45 = vpop.f32.mrf.mxu1 }
 0x1aa   :  { %2832 = vmatpush.bf16.msra.mxu3 %v4719_v57  ;;  %3147 = vmatpush.bf16.msrb.mxu2 %v5353_v22 }
 0x1ae   :  { %2833 = vmatpush.bf16.msra.mxu3 %v4703_v50  ;;  %3148 = vmatpush.bf16.msrb.mxu2 %v5352_v33  ;;  %v2686_v50 = vadd.f32 %v2685_v40, %v1971_v43 }
 0x1b2   :  { %2834 = vmatpush.bf16.msra.mxu3 %v4687_v53  ;;  %3149 = vmatpush.bf16.msrb.mxu2 %v5351_v38  ;;  %v2700_v53 = vadd.f32 %v2699_v45, %v2686_v50  ;;  %v5372_v45 = vld [vmem:[%s7874_s7 + $0x28] sm:$0xff]  ;;  %v5382_v50 = vld [vmem:[%s7875_s9 + $0x38] sm:$0xff] }
 0x1b6   :  { %2835 = vmatpush.bf16.msra.mxu3 %v4671_v56 }
 0x1b9   :  { %2836 = vmatmul.bf16.vlgmr.msra.gmra.mxu3 %v7580_v1  ;;  %v5350_v1 = vld [vmem:[%s7870_s5 + $0x78] sm:$0xff] }
 0x1ba   :  { %3128 = vmatpush.bf16.msrb.mxu1 %v5350_v1  ;;  %3156 = vmatpush.bf16.msrb.mxu3 %v5366_v39  ;;  %v1972_v1 = vperm.slane %v7758_v37, 2 }
 0x1be   :  { %3129 = vmatpush.bf16.msrb.mxu1 %v5349_v3  ;;  %3157 = vmatpush.bf16.msrb.mxu3 %v5365_v0  ;;  %v5371_v0 = vld [vmem:[%s7874_s7 + $0x20] sm:$0xff] }
 0x1c0   :  { %v2739_v52 = vpop.f32.mrf.mxu0 }
 0x1c1   :  { %v2753_v61 = vpop.f32.mrf.mxu1 }
 0x1c2   :  { %3130 = vmatpush.bf16.msrb.mxu1 %v5348_v5  ;;  %3158 = vmatpush.bf16.msrb.mxu3 %v5364_v48  ;;  %v5367_v48 = vld [vmem:[%s7874_s7] sm:$0xff] }
 0x1c6   :  { %3131 = vmatpush.bf16.msrb.mxu1 %v5347_v7  ;;  %3159 = vmatpush.bf16.msrb.mxu3 %v5363_v55  ;;  %v2740_v7 = vadd.f32 %v2739_v52, %v1972_v1  ;;  %v5380_v52 = vld [vmem:[%s7875_s9 + $0x28] sm:$0xff]  ;;  %v5379_v55 = vld [vmem:[%s7875_s9 + $0x20] sm:$0xff] }
 0x1c8   :  { %v2741_v6 = vpop.f32.mrf.mxu0  ;;  %v2754_v23 = vadd.f32 %v2753_v61, %v2740_v7 }
 0x1c9   :  { %v2742_v9 = vadd.f32 %v2741_v6, %v1972_v1 }
 0x1ca   :  { %3132 = vmatpush.bf16.msrb.mxu1 %v5346_v8  ;;  %3160 = vmatpush.bf16.msrb.mxu3 %v5362_v4  ;;  %v5361_v8 = vld [vmem:[%s7870_s5 + $0xd0] sm:$0xff] }
 0x1ce   :  { %3133 = vmatpush.bf16.msrb.mxu1 %v5345_v12  ;;  %3161 = vmatpush.bf16.msrb.mxu3 %v5361_v8  ;;  %v2755_v12 = vpop.f32.mrf.mxu1 }
 0x1d2   :  { %v2655_v10 = vpop.f32.mrf.mxu2  ;;  %3134 = vmatpush.bf16.msrb.mxu1 %v5344_v13  ;;  %v2756_v13 = vadd.f32 %v2755_v12, %v2742_v9  ;;  %v5378_v12 = vld [vmem:[%s7875_s9 + $0x18] sm:$0xff] }
 0x1d3   :  { %v2656_v28 = vadd.f32 %v2655_v10, %v2642_v25  ;;  %v5360_v10 = vld [vmem:[%s7870_s5 + $0xc8] sm:$0xff]  ;;  %v1973_v25 = vperm.slane %v7758_v37, 3  ;;  %v5374_v37 = vld [vmem:[%s7874_s7 + $0x38] sm:$0xff] }
 0x1d4   :  { %3162 = vmatpush.bf16.msrb.mxu3 %v5360_v10  ;;  %3241 = vmatpush.bf16.msra.mxu0 %v5374_v37 }
 0x1d6   :  { %3135 = vmatpush.bf16.msrb.mxu1 %v5343_v11  ;;  %v5359_v11 = vld [vmem:[%s7870_s5 + $0xc0] sm:$0xff] }
 0x1d8   :  { %3163 = vmatpush.bf16.msrb.mxu3 %v5359_v11 }
 0x1da   :  { %v2657_v41 = vpop.f32.mrf.mxu2  ;;  %3326 = vmatpush.bf16.msra.mxu1 %v5382_v50 }
 0x1db   :  { %v2658_v31 = vadd.f32 %v2657_v41, %v2644_v26 }
 0x1e0   :  { %v2795_v20 = vpop.f32.mrf.mxu0 }
 0x1e1   :  { %v2809_v21 = vpop.f32.mrf.mxu1  ;;  %v2796_v26 = vadd.f32 %v2795_v20, %v1973_v25 }
 0x1e2   :  { %v2711_v29 = vpop.f32.mrf.mxu2 }
 0x1e3   :  { %v2712_v54 = vadd.f32 %v2711_v29, %v2698_v51  ;;  %v2810_v29 = vadd.f32 %v2809_v21, %v2796_v26  ;;  %v5381_v51 = vld [vmem:[%s7875_s9 + $0x30] sm:$0xff]  ;;  %v5390_v21 = vld [vmem:[%s7876_s10] ss:$0 sm:$0xff] }
 0x1e4   :  { %3327 = vmatpush.bf16.msra.mxu1 %v5381_v51 }
 0x1e8   :  { %v2797_v22 = vpop.f32.mrf.mxu0  ;;  %3328 = vmatpush.bf16.msra.mxu1 %v5380_v52 }
 0x1ea   :  { %v2713_v46 = vpop.f32.mrf.mxu2 }
 0x1eb   :  { %v2714_v56 = vadd.f32 %v2713_v46, %v2700_v53  ;;  %v5370_v46 = vld [vmem:[%s7874_s7 + $0x18] sm:$0xff] }
 0x1ec   :  { %3329 = vmatpush.bf16.msra.mxu1 %v5379_v55 }
 0x1f0   :  { %3330 = vmatpush.bf16.msra.mxu1 %v5378_v12 }
 0x1f8   :  { %v2767_v63 = vpop.f32.mrf.mxu2 }
 0x1f9   :  { %v2768_v14 = vadd.f32 %v2767_v63, %v2754_v23 }
 0x1fc   :  { %v2669_v18 = vpop.f32.mrf.mxu3 }
 0x1fd   :  { %v2670_v32 = vadd.f32 %v2669_v18, %v2656_v28  ;;  %v2798_v28 = vadd.f32 %v2797_v22, %v1973_v25 }
 0x1ff   :  { %v2842_v36 = vmax.f32 %v2670_v32, 0.0 }
 0x200   :  { %v2769_v19 = vpop.f32.mrf.mxu2 }
 0x201   :  { %v2770_v42 = vadd.f32 %v2769_v19, %v2756_v13  ;;  %v5377_v19 = vld [vmem:[%s7875_s9 + $0x10] sm:$0xff]  ;;  %v5376_v13 = vld [vmem:[%s7875_s9 + $0x8] sm:$0xff] }
 0x202   :  { %3331 = vmatpush.bf16.msra.mxu1 %v5377_v19 }
 0x204   :  { %v2671_v34 = vpop.f32.mrf.mxu3 }
 0x205   :  { %v2672_v35 = vadd.f32 %v2671_v34, %v2658_v31  ;;  %v2811_v31 = vpop.f32.mrf.mxu1 }
 0x206   :  { %v2812_v33 = vadd.f32 %v2811_v31, %v2798_v28  ;;  %3332 = vmatpush.bf16.msra.mxu1 %v5376_v13 }
 0x207   :  { %v2846_v49 = vmax.f32 %v2672_v35, 0.0 }
 0x209   :  { %v2850_v44 = vpack.c.bf16 %v2846_v49, %v2842_v36 }
 0x20b   :  { %3122 = vmatmul.bf16.vlgmr.msrb.gmra.mxu0 %v2850_v44  ;;  %v5373_v44 = vld [vmem:[%s7874_s7 + $0x30] sm:$0xff] }
 0x20c   :  { %v2725_v57 = vpop.f32.mrf.mxu3  ;;  %3242 = vmatpush.bf16.msra.mxu0 %v5373_v44 }
 0x20d   :  { %v2726_v58 = vadd.f32 %v2725_v57, %v2712_v54  ;;  %v5369_v57 = vld [vmem:[%s7874_s7 + $0x10] sm:$0xff] }
 0x20f   :  { %v2843_v30 = vmax.f32 %v2726_v58, 0.0  ;;  %v5388_v58 = vld [vmem:[%s7871_s6] ss:$0 sm:$0xff] }
 0x210   :  { %3243 = vmatpush.bf16.msra.mxu0 %v5372_v45 }
 0x214   :  { %v2727_v59 = vpop.f32.mrf.mxu3  ;;  %3244 = vmatpush.bf16.msra.mxu0 %v5371_v0 }
 0x215   :  { %v2728_v60 = vadd.f32 %v2727_v59, %v2714_v56 }
 0x217   :  { %v2847_v3 = vmax.f32 %v2728_v60, 0.0 }
 0x218   :  { %v2823_v24 = vpop.f32.mrf.mxu2  ;;  %3245 = vmatpush.bf16.msra.mxu0 %v5370_v46 }
 0x219   :  { %v2851_v5 = vpack.c.bf16 %v2847_v3, %v2843_v30  ;;  %v2824_v34 = vadd.f32 %v2823_v24, %v2810_v29 }
 0x21b   :  { %3136 = vmatmul.bf16.vlgmr.msrb.gmra.mxu1 %v2851_v5 }
 0x21c   :  { %v2781_v62 = vpop.f32.mrf.mxu3  ;;  %3246 = vmatpush.bf16.msra.mxu0 %v5369_v57 }
 0x21d   :  { %v2782_v15 = vadd.f32 %v2781_v62, %v2768_v14  ;;  %v5375_v14 = vld [vmem:[%s7875_s9] sm:$0xff] }
 0x21e   :  { %3333 = vmatpush.bf16.msra.mxu1 %v5375_v14 }
 0x21f   :  { %v2844_v16 = vmax.f32 %v2782_v15, 0.0  ;;  %v5389_v15 = vld [vmem:[%s7873_s8] ss:$0 sm:$0xff] }
 0x220   :  { %v2825_v32 = vpop.f32.mrf.mxu2  ;;  %3247 = vmatpush.bf16.msra.mxu0 %v5368_v47 }
 0x221   :  { %v2826_v35 = vadd.f32 %v2825_v32, %v2812_v33 }
 0x224   :  { %v2783_v2 = vpop.f32.mrf.mxu3  ;;  %3248 = vmatpush.bf16.msra.mxu0 %v5367_v48 }
 0x225   :  { %v2784_v41 = vadd.f32 %v2783_v2, %v2770_v42 }
 0x227   :  { %v2848_v17 = vmax.f32 %v2784_v41, 0.0 }
 0x229   :  { %v2852_v18 = vpack.c.bf16 %v2848_v17, %v2844_v16 }
 0x22b   :  { %3150 = vmatmul.bf16.vlgmr.msrb.gmra.mxu2 %v2852_v18 }
 0x23c   :  { %v2837_v27 = vpop.f32.mrf.mxu3 }
 0x23d   :  { %v2838_v36 = vadd.f32 %v2837_v27, %v2824_v34 }
 0x23f   :  { %v2845_v39 = vmax.f32 %v2838_v36, 0.0 }
 0x244   :  { %v2839_v49 = vpop.f32.mrf.mxu3 }
 0x245   :  { %v2840_v38 = vadd.f32 %v2839_v49, %v2826_v35 }
 0x247   :  { %v2849_v40 = vmax.f32 %v2840_v38, 0.0 }
 0x249   :  { %v2853_v43 = vpack.c.bf16 %v2849_v40, %v2845_v39 }
 0x24b   :  { %3164 = vmatmul.bf16.vlgmr.msrb.gmra.mxu3 %v2853_v43 }
 0x288   :  { %v3123_v53 = vpop.f32.mrf.mxu0 }
 0x289   :  { %v3124_v61 = vadd.f32 %v5388_v58, %v3123_v53 }
 0x290   :  { %v3125_v59 = vpop.f32.mrf.mxu0 }
 0x291   :  { %v3126_v1 = vadd.f32 %v5388_v58, %v3125_v59 }
 0x298   :  { %v3137_v54 = vpop.f32.mrf.mxu1 }
 0x299   :  { %v3138_v30 = vadd.f32 %v3137_v54, %v3124_v61 }
 0x2a0   :  { %v3139_v63 = vpop.f32.mrf.mxu1 }
 0x2a1   :  { %v3140_v4 = vadd.f32 %v3139_v63, %v3126_v1 }
 0x2ae   :  { %v3151_v56 = vpop.f32.mrf.mxu2 }
 0x2af   :  { %v3152_v5 = vadd.f32 %v3151_v56, %v3138_v30 }
 0x2b6   :  { %v3153_v3 = vpop.f32.mrf.mxu2 }
 0x2b7   :  { %v3154_v6 = vadd.f32 %v3153_v3, %v3140_v4 }
 0x2ce   :  { %v3165_v60 = vpop.f32.mrf.mxu3 }
 0x2cf   :  { %v3166_v7 = vadd.f32 %v3165_v60, %v3152_v5 }
 0x2d1   :  { %v3170_v9 = vmax.f32 %v3166_v7, 0.0 }
 0x2d6   :  { %v3167_v8 = vpop.f32.mrf.mxu3 }
 0x2d7   :  { %v3168_v62 = vadd.f32 %v3167_v8, %v3154_v6 }
 0x2d9   :  { %v3171_v23 = vmax.f32 %v3168_v62, 0.0 }
 0x2db   :  { %v3172_v10 = vpack.c.bf16 %v3171_v23, %v3170_v9 }
 0x2dd   :  { %3249 = vmatmul.bf16.vlgmr.msra.gmra.mxu0 %v3172_v10 }
 0x35a   :  { %v3250_v42 = vpop.f32.mrf.mxu0 }
 0x35b   :  { %v3251_v11 = vadd.f32 %v5389_v15, %v3250_v42 }
 0x35d   :  { %v3255_v16 = vmax.f32 %v3251_v11, 0.0 }
 0x362   :  { %v3252_v2 = vpop.f32.mrf.mxu0 }
 0x363   :  { %v3253_v41 = vadd.f32 %v5389_v15, %v3252_v2 }
 0x365   :  { %v3256_v17 = vmax.f32 %v3253_v41, 0.0 }
 0x367   :  { %v3257_v18 = vpack.c.bf16 %v3256_v17, %v3255_v16 }
 0x369   :  { %3334 = vmatmul.bf16.vlgmr.msra.gmra.mxu1 %v3257_v18 }
 0x3e6   :  { %v3335_v20 = vpop.f32.mrf.mxu1 }
 0x3e7   :  { %v3336_v25 = vadd.f32 %v5390_v21, %v3335_v20 }
 0x3ee   :  { %v3337_v24 = vpop.f32.mrf.mxu1 }
 0x3ef   :  { %v3338_v22 = vadd.f32 %v5390_v21, %v3337_v24 }
 0x3f1   :  { %v5386_v26 = vpack.c.bf16 %v3338_v22, %v3336_v25 }
 0x3f3   :  { %5387 = vst [vmem:[%s7877_s11] sm:$0xff] %v5386_v26  }

</bundles_post_ra>
